<compile_context>
chip_gen: v6e
topology: v6e:2x2x1
jax: 0.10.0
libtpu: 0.0.40
codegen_flags: <defaults>
</compile_context>

<pallas_src>
import functools

import jax
import jax.numpy as jnp
from jax.experimental import pallas as pl
from jax.experimental.pallas import tpu as pltpu


def _round_up(x, m):
    return (x + m - 1) // m * m


def vae_kernel(enc_ref, attn_w_ref, attn_b_ref, w_heads_ref, b_heads_ref,
               eps_ref, w1_ref, b1_ref, w2_ref, b2_ref,
               out_ref,
               m_sc, l_sc, acc_sc,
               *, latent_dim, out_width):
    si = pl.program_id(1)
    n_si = pl.num_programs(1)

    # ---- init running max / denom / z_rep accumulator on first seq tile ----
    @pl.when(si == 0)
    def _init():
        m_sc[...] = jnp.full(m_sc.shape, -jnp.inf, jnp.float32)
        l_sc[...] = jnp.zeros(l_sc.shape, jnp.float32)
        acc_sc[...] = jnp.zeros(acc_sc.shape, jnp.float32)

    # ---- attention scores for this (batch, seq) tile ------------------------
    enc = enc_ref[...]                        # [TB, TS, E]  bf16 (HBM traffic halved)
    attn_w = attn_w_ref[...]                  # [1, E] f32 row (lane-aligned broadcast)
    # bf16 * f32 promotes to f32; softmax math stays in f32 on the small scores
    # (v5e has no bf16 VPU/EUP path).
    scores = jnp.sum(enc * attn_w, axis=-1) + attn_b_ref[0, 0]     # [TB, TS] f32

    # ---- online softmax + z_rep accumulation (single-query flash attention) --
    m_prev = m_sc[...]                                              # [TB, 1]
    m_new = jnp.maximum(m_prev, jnp.max(scores, axis=-1, keepdims=True))
    alpha = jnp.exp(m_prev - m_new)                                 # [TB, 1]
    p = jnp.exp(scores - m_new)                                     # [TB, TS] f32
    l_sc[...] = alpha * l_sc[...] + jnp.sum(p, axis=-1, keepdims=True)
    # MXU batched matvec per batch tile: [TB,1,TS] x [TB,TS,E] -> [TB,1,E], f32 acc.
    zupd = jnp.einsum("bqs,bse->bqe", p[:, None, :].astype(enc.dtype), enc,
                      preferred_element_type=jnp.float32)
    acc_sc[...] = alpha[:, :, None] * acc_sc[...] + zupd
    m_sc[...] = m_new

    # ---- epilogue: fused heads + reparameterization + predictor -------------
    @pl.when(si == n_si - 1)
    def _finalize():
        L = latent_dim
        inv_l = pl.reciprocal(l_sc[...], approx=True)               # EUP slot (free)
        z_rep = acc_sc[...][:, 0, :] * inv_l                        # [TB, E] f32

        # one lane-dense matmul for both heads: columns [mu | logvar | 0-pad]
        heads = jnp.dot(z_rep, w_heads_ref[...],
                        preferred_element_type=jnp.float32) + b_heads_ref[...]
        mu = heads[:, :L]                                           # [TB, L]
        logvar = heads[:, L:2 * L]                                  # [TB, L]
        z = mu + jnp.exp(0.5 * logvar) * eps_ref[...]               # [TB, L]

        h = jnp.maximum(
            jnp.dot(mu, w1_ref[...], preferred_element_type=jnp.float32)
            + b1_ref[...], 0.0)                                     # [TB, H]
        prop = jnp.sum(h * w2_ref[...], axis=-1, keepdims=True) + b2_ref[0, 0]

        # Assemble the whole [TB, out_width] slab in registers and issue a
        # SINGLE unmasked lane-dense store (one HBM writeback DMA).
        pieces = [z, mu, logvar, prop]
        pad_w = out_width - (3 * L + 1)          # static Python int
        if pad_w:
            pieces.append(jnp.zeros((z.shape[0], pad_w), jnp.float32))
        out_ref[...] = jnp.concatenate(pieces, axis=-1)


def vae_encode_predict(enc_out, params, eps, *, batch_tile=None, seq_tile=None):
    """enc_out: [B, S, E] (bf16 or f32), eps: [B, L] f32 reparameterization noise."""
    B, S, E = enc_out.shape
    L = params["w_mu"].shape[1]
    H = params["w1"].shape[1]

    TB = batch_tile if batch_tile is not None else (8 if B % 8 == 0 else B)
    TS = seq_tile if seq_tile is not None else (256 if S % 256 == 0 else S)
    assert B % TB == 0 and S % TS == 0, "B/S must be divisible by the tile sizes"
    assert (TB % 8 == 0) or (TB == B)
    assert (TS % 16 == 0) or (TS == S)      # bf16 sublane packing

    HEAD_P = _round_up(max(2 * L, 128), 128)     # fused mu|logvar head width
    OUT_P = _round_up(max(3 * L + 1, 128), 128)  # lane-dense output slab width

    # Pack + zero-pad the two latent heads into one [E, HEAD_P] weight so a
    # single MXU matmul produces [mu | logvar] with full lane occupancy.
    w_heads = jnp.zeros((E, HEAD_P), jnp.float32)
    w_heads = w_heads.at[:, :L].set(params["w_mu"]).at[:, L:2 * L].set(params["w_lv"])
    b_heads = jnp.zeros((1, HEAD_P), jnp.float32)
    b_heads = b_heads.at[:, :L].set(params["b_mu"]).at[:, L:2 * L].set(params["b_lv"])

    kernel = functools.partial(vae_kernel, latent_dim=L, out_width=OUT_P)

    vmem_spec = lambda shape: pl.BlockSpec(shape, lambda bi, si: (0, 0))
    smem = pltpu.MemorySpace.SMEM

    out = pl.pallas_call(
        kernel,
        out_shape=jax.ShapeDtypeStruct((B, OUT_P), jnp.float32),
        grid_spec=pltpu.PrefetchScalarGridSpec(
            num_scalar_prefetch=0,
            grid=(B // TB, S // TS),
            in_specs=[
                pl.BlockSpec((TB, TS, E), lambda bi, si: (bi, si, 0)),  # enc_out tile
                vmem_spec((1, E)),                                      # attn_w row
                pl.BlockSpec(memory_space=smem),                        # attn_b scalar
                vmem_spec((E, HEAD_P)),                                 # fused head W
                vmem_spec((1, HEAD_P)),                                 # fused head b
                pl.BlockSpec((TB, L), lambda bi, si: (bi, 0)),          # eps
                vmem_spec((L, H)),                                      # predictor W1
                vmem_spec((1, H)),                                      # predictor b1
                vmem_spec((1, H)),                                      # predictor w2 row
                pl.BlockSpec(memory_space=smem),                        # b2 scalar
            ],
            out_specs=pl.BlockSpec((TB, OUT_P), lambda bi, si: (bi, 0)),
            scratch_shapes=[
                pltpu.VMEM((TB, 1), jnp.float32),      # running max
                pltpu.VMEM((TB, 1), jnp.float32),      # running softmax denom
                pltpu.VMEM((TB, 1, E), jnp.float32),   # z_rep accumulator
            ],
        ),
        compiler_params=pltpu.CompilerParams(
            # batch axis parallel -> shards across the 2 TensorCores on v7x;
            # seq axis is the online-softmax reduction.
            dimension_semantics=("parallel", "arbitrary"),
            # explicit budget with headroom below v7x's 64 MiB physical VMEM
            # (double-buffered bf16 enc tiles fit comfortably).
            vmem_limit_bytes=48 * 1024 * 1024,
        ),
    )(enc_out,
      params["attn_w"], params["attn_b"],
      w_heads, b_heads, eps,
      params["w1"], params["b1"], params["w2"], params["b2"])

    z = out[:, :L]
    mu = out[:, L:2 * L]
    logvar = out[:, 2 * L:3 * L]
    prop = out[:, 3 * L:3 * L + 1]
    return z, mu, logvar, prop


def init_params(key, enc_dim, latent_dim, pred_hidden):
    ks = jax.random.split(key, 5)
    s = 0.05
    return {
        # nn.Linear(enc_dim, 1): weight is [1, enc_dim] (lane-major row), bias scalar
        "attn_w": s * jax.random.normal(ks[0], (1, enc_dim), jnp.float32),
        "attn_b": 0.10 * jnp.ones((1, 1), jnp.float32),
        # LatentEncoder mu / logvar heads, stored as [in, out] for x @ W
        "w_mu": s * jax.random.normal(ks[1], (enc_dim, latent_dim), jnp.float32),
        "b_mu": 0.01 * jnp.ones((1, latent_dim), jnp.float32),
        "w_lv": s * jax.random.normal(ks[2], (enc_dim, latent_dim), jnp.float32),
        "b_lv": -0.01 * jnp.ones((1, latent_dim), jnp.float32),
        # DropoutPredictor (eval mode -> dropout is identity)
        "w1": s * jax.random.normal(ks[3], (latent_dim, pred_hidden), jnp.float32),
        "b1": 0.01 * jnp.ones((1, pred_hidden), jnp.float32),
        "w2": s * jax.random.normal(ks[4], (1, pred_hidden), jnp.float32),  # [1, H] row
        "b2": 0.05 * jnp.ones((1, 1), jnp.float32),
    }


def reference(enc_out, params, eps):
    """Pure-JAX f32 reference matching the PyTorch module semantics."""
    x = enc_out.astype(jnp.float32)
    scores = jnp.einsum("bse,oe->bso", x, params["attn_w"]) + params["attn_b"][0, 0]
    attn = jax.nn.softmax(scores, axis=1)                      # [B, S, 1]
    z_rep = jnp.einsum("bso,bse->be", attn, x)                 # [B, E]
    mu = z_rep @ params["w_mu"] + params["b_mu"]
    logvar = z_rep @ params["w_lv"] + params["b_lv"]
    z = mu + jnp.exp(0.5 * logvar) * eps
    h = jax.nn.relu(mu @ params["w1"] + params["b1"])
    prop = h @ params["w2"].T + params["b2"]
    return z, mu, logvar, prop


if __name__ == "__main__":
    # Small shapes consistent with the module: batch=16, seq=32, enc_dim=32,
    # latent_dim=16, pred_hidden_dim=32 -> grid of (2 batch tiles, 2 seq tiles),
    # exercising both the online-softmax accumulation and batch parallelism.
    B, S, E, L, H = 16, 32, 32, 16, 32
    TB, TS = 8, 16

    key = jax.random.PRNGKey(0)
    k_in, k_eps, k_par = jax.random.split(key, 3)

    # Simulated ESM2 encoder output, kept in bf16 end-to-end.
    enc_out = jax.random.normal(k_in, (B, S, E), jnp.float32).astype(jnp.bfloat16)
    eps = jax.random.normal(k_eps, (B, L), jnp.float32)   # reparameterization noise
    params = init_params(k_par, E, L, H)

    z, mu, logvar, prop = vae_encode_predict(enc_out, params, eps,
                                             batch_tile=TB, seq_tile=TS)
    jax.block_until_ready((z, mu, logvar, prop))

    z_r, mu_r, lv_r, prop_r = reference(enc_out, params, eps)
    # bf16 softmax weights on the MXU + approx reciprocal -> loosened tolerance.
    assert jnp.allclose(mu, mu_r, atol=2e-2), "mu mismatch"
    assert jnp.allclose(logvar, lv_r, atol=2e-2), "logvar mismatch"
    assert jnp.allclose(z, z_r, atol=2e-2), "z mismatch"
    assert jnp.allclose(prop, prop_r, atol=2e-2), "prop mismatch"
    assert z.shape == (B, L) and mu.shape == (B, L)
    assert logvar.shape == (B, L) and prop.shape == (B, 1)

    print("KERNEL_OK")
</pallas_src>

<mosaic_0001>
module attributes {stable_mosaic.version = 11 : i64} {
  func.func @vae_kernel(%arg0: i32, %arg1: i32, %arg2: memref<8x16x32xbf16, #tpu.memory_space<vmem>>, %arg3: memref<1x32xf32, #tpu.memory_space<vmem>>, %arg4: memref<1x1xf32, #tpu.memory_space<smem>>, %arg5: memref<32x128xf32, #tpu.memory_space<vmem>>, %arg6: memref<1x128xf32, #tpu.memory_space<vmem>>, %arg7: memref<8x16xf32, #tpu.memory_space<vmem>>, %arg8: memref<16x32xf32, #tpu.memory_space<vmem>>, %arg9: memref<1x32xf32, #tpu.memory_space<vmem>>, %arg10: memref<1x32xf32, #tpu.memory_space<vmem>>, %arg11: memref<1x1xf32, #tpu.memory_space<smem>>, %arg12: memref<8x128xf32, #tpu.memory_space<vmem>>, %arg13: memref<8x1xf32, #tpu.memory_space<vmem>>, %arg14: memref<8x1xf32, #tpu.memory_space<vmem>>, %arg15: memref<8x1x32xf32, #tpu.memory_space<vmem>>) attributes {dimension_semantics = [#tpu.dimension_semantics<parallel>, #tpu.dimension_semantics<arbitrary>], iteration_bounds = array<i64: 2, 2>, scalar_prefetch = 0 : i64, scratch_operands = 3 : i64, tpu.core_type = #tpu.core_type<tc>, window_params = [{transform_indices = @transform_0, window_bounds = array<i64: 8, 16, 32>}, {pipeline_mode = #tpu.pipeline_mode<synchronous>, transform_indices = @transform_1, window_bounds = array<i64: 1, 32>}, {transform_indices = @transform_2, window_bounds = array<i64: 1, 1>}, {pipeline_mode = #tpu.pipeline_mode<synchronous>, transform_indices = @transform_3, window_bounds = array<i64: 32, 128>}, {pipeline_mode = #tpu.pipeline_mode<synchronous>, transform_indices = @transform_4, window_bounds = array<i64: 1, 128>}, {transform_indices = @transform_5, window_bounds = array<i64: 8, 16>}, {pipeline_mode = #tpu.pipeline_mode<synchronous>, transform_indices = @transform_6, window_bounds = array<i64: 16, 32>}, {pipeline_mode = #tpu.pipeline_mode<synchronous>, transform_indices = @transform_7, window_bounds = array<i64: 1, 32>}, {pipeline_mode = #tpu.pipeline_mode<synchronous>, transform_indices = @transform_8, window_bounds = array<i64: 1, 32>}, {transform_indices = @transform_9, window_bounds = array<i64: 1, 1>}, {transform_indices = @transform_10, window_bounds = array<i64: 8, 128>}]} {
    %c0_i32 = arith.constant 0 : i32
    %0 = arith.cmpi eq, %arg1, %c0_i32 : i32
    %1 = arith.extui %0 : i1 to i32
    %c0_i32_0 = arith.constant 0 : i32
    %2 = arith.cmpi ne, %1, %c0_i32_0 : i32
    scf.if %2 {
      %cst_25 = arith.constant 0xFF800000 : f32
      %41 = vector.broadcast %cst_25 : f32 to vector<8x1xf32>
      %c0_26 = arith.constant 0 : index
      %c0_27 = arith.constant 0 : index
      %42 = vector.load %arg13[%c0_26, %c0_27] : memref<8x1xf32, #tpu.memory_space<vmem>>, vector<8x1xf32>
      tpu.vector_store %arg13[%c0_26, %c0_27], %41 {strides = array<i32>} : memref<8x1xf32, #tpu.memory_space<vmem>>, vector<8x1xf32>,
      %cst_28 = arith.constant 0.000000e+00 : f32
      %43 = vector.broadcast %cst_28 : f32 to vector<8x1xf32>
      %c0_29 = arith.constant 0 : index
      %c0_30 = arith.constant 0 : index
      %44 = vector.load %arg14[%c0_29, %c0_30] : memref<8x1xf32, #tpu.memory_space<vmem>>, vector<8x1xf32>
      tpu.vector_store %arg14[%c0_29, %c0_30], %43 {strides = array<i32>} : memref<8x1xf32, #tpu.memory_space<vmem>>, vector<8x1xf32>,
      %cst_31 = arith.constant 0.000000e+00 : f32
      %45 = vector.broadcast %cst_31 : f32 to vector<8x1x32xf32>
      %c0_32 = arith.constant 0 : index
      %c0_33 = arith.constant 0 : index
      %c0_34 = arith.constant 0 : index
      %46 = vector.load %arg15[%c0_32, %c0_33, %c0_34] : memref<8x1x32xf32, #tpu.memory_space<vmem>>, vector<8x1x32xf32>
      tpu.vector_store %arg15[%c0_32, %c0_33, %c0_34], %45 {strides = array<i32>} : memref<8x1x32xf32, #tpu.memory_space<vmem>>, vector<8x1x32xf32>,
    } else {
    }
    %c0 = arith.constant 0 : index
    %c0_1 = arith.constant 0 : index
    %c0_2 = arith.constant 0 : index
    %3 = vector.load %arg2[%c0, %c0_1, %c0_2] : memref<8x16x32xbf16, #tpu.memory_space<vmem>>, vector<8x16x32xbf16>
    %c0_3 = arith.constant 0 : index
    %c0_4 = arith.constant 0 : index
    %4 = vector.load %arg3[%c0_3, %c0_4] : memref<1x32xf32, #tpu.memory_space<vmem>>, vector<1x32xf32>
    %5 = arith.extf %3 : vector<8x16x32xbf16> to vector<8x16x32xf32>
    %6 = vector.shape_cast %4 : vector<1x32xf32> to vector<1x1x32xf32>
    %7 = vector.broadcast %6 : vector<1x1x32xf32> to vector<8x16x32xf32>
    %8 = arith.mulf %5, %7 : vector<8x16x32xf32>
    %cst = arith.constant dense<0.000000e+00> : vector<8x16xf32>
    %9 = vector.multi_reduction <add>, %8, %cst [2] : vector<8x16x32xf32> to vector<8x16xf32>
    %c0_5 = arith.constant 0 : index
    %c0_6 = arith.constant 0 : index
    %10 = memref.load %arg4[%c0_5, %c0_6] : memref<1x1xf32, #tpu.memory_space<smem>>
    %11 = vector.broadcast %10 : f32 to vector<8x16xf32>
    %12 = arith.addf %9, %11 : vector<8x16xf32>
    %c0_7 = arith.constant 0 : index
    %c0_8 = arith.constant 0 : index
    %13 = vector.load %arg13[%c0_7, %c0_8] : memref<8x1xf32, #tpu.memory_space<vmem>>, vector<8x1xf32>
    %cst_9 = arith.constant dense<0xFF800000> : vector<8xf32>
    %14 = vector.multi_reduction <maximumf>, %12, %cst_9 [1] : vector<8x16xf32> to vector<8xf32>
    %15 = vector.shape_cast %14 : vector<8xf32> to vector<8x1xf32>
    %16 = arith.maximumf %13, %15 : vector<8x1xf32>
    %17 = arith.subf %13, %16 : vector<8x1xf32>
    %18 = math.exp %17 : vector<8x1xf32>
    %19 = vector.broadcast %16 : vector<8x1xf32> to vector<8x16xf32>
    %20 = arith.subf %12, %19 : vector<8x16xf32>
    %21 = math.exp %20 : vector<8x16xf32>
    %c0_10 = arith.constant 0 : index
    %c0_11 = arith.constant 0 : index
    %22 = vector.load %arg14[%c0_10, %c0_11] : memref<8x1xf32, #tpu.memory_space<vmem>>, vector<8x1xf32>
    %23 = arith.mulf %18, %22 : vector<8x1xf32>
    %cst_12 = arith.constant dense<0.000000e+00> : vector<8xf32>
    %24 = vector.multi_reduction <add>, %21, %cst_12 [1] : vector<8x16xf32> to vector<8xf32>
    %25 = vector.shape_cast %24 : vector<8xf32> to vector<8x1xf32>
    %26 = arith.addf %23, %25 : vector<8x1xf32>
    %c0_13 = arith.constant 0 : index
    %c0_14 = arith.constant 0 : index
    %27 = vector.load %arg14[%c0_13, %c0_14] : memref<8x1xf32, #tpu.memory_space<vmem>>, vector<8x1xf32>
    tpu.vector_store %arg14[%c0_13, %c0_14], %26 {strides = array<i32>} : memref<8x1xf32, #tpu.memory_space<vmem>>, vector<8x1xf32>,
    %28 = vector.shape_cast %21 : vector<8x16xf32> to vector<8x1x16xf32>
    %29 = arith.truncf %28 : vector<8x1x16xf32> to vector<8x1x16xbf16>
    "tpu.trace_start"() <{level = 10 : i32, message = "bqs,bse->bqe"}> : () -> ()
    %cst_15 = arith.constant dense<0.000000e+00> : vector<8x1x32xf32>
    %30 = tpu.matmul %29, %3, %cst_15 {dimension_numbers = #tpu.dot_dimension_numbers<[2], [1], [1], [2], [0, 0, 0, 1, 1, 2], [0], [0]>} : vector<8x1x16xbf16>, vector<8x16x32xbf16>, vector<8x1x32xf32> -> vector<8x1x32xf32>
    "tpu.trace_stop"() : () -> ()
    %31 = vector.shape_cast %18 : vector<8x1xf32> to vector<8x1x1xf32>
    %c0_16 = arith.constant 0 : index
    %c0_17 = arith.constant 0 : index
    %c0_18 = arith.constant 0 : index
    %32 = vector.load %arg15[%c0_16, %c0_17, %c0_18] : memref<8x1x32xf32, #tpu.memory_space<vmem>>, vector<8x1x32xf32>
    %33 = vector.broadcast %31 : vector<8x1x1xf32> to vector<8x1x32xf32>
    %34 = arith.mulf %33, %32 : vector<8x1x32xf32>
    %35 = arith.addf %34, %30 : vector<8x1x32xf32>
    %c0_19 = arith.constant 0 : index
    %c0_20 = arith.constant 0 : index
    %c0_21 = arith.constant 0 : index
    %36 = vector.load %arg15[%c0_19, %c0_20, %c0_21] : memref<8x1x32xf32, #tpu.memory_space<vmem>>, vector<8x1x32xf32>
    tpu.vector_store %arg15[%c0_19, %c0_20, %c0_21], %35 {strides = array<i32>} : memref<8x1x32xf32, #tpu.memory_space<vmem>>, vector<8x1x32xf32>,
    %c0_22 = arith.constant 0 : index
    %c0_23 = arith.constant 0 : index
    %37 = vector.load %arg13[%c0_22, %c0_23] : memref<8x1xf32, #tpu.memory_space<vmem>>, vector<8x1xf32>
    tpu.vector_store %arg13[%c0_22, %c0_23], %16 {strides = array<i32>} : memref<8x1xf32, #tpu.memory_space<vmem>>, vector<8x1xf32>,
    %c1_i32 = arith.constant 1 : i32
    %38 = arith.cmpi eq, %arg1, %c1_i32 : i32
    %39 = arith.extui %38 : i1 to i32
    %c0_i32_24 = arith.constant 0 : i32
    %40 = arith.cmpi ne, %39, %c0_i32_24 : i32
    scf.if %40 {
      %c0_25 = arith.constant 0 : index
      %c0_26 = arith.constant 0 : index
      %41 = vector.load %arg14[%c0_25, %c0_26] : memref<8x1xf32, #tpu.memory_space<vmem>>, vector<8x1xf32>
      %42 = tpu.reciprocal %41 {approx = true} : vector<8x1xf32> -> vector<8x1xf32>
      %c0_27 = arith.constant 0 : index
      %c0_28 = arith.constant 0 : index
      %c0_29 = arith.constant 0 : index
      %43 = vector.load %arg15[%c0_27, %c0_28, %c0_29] : memref<8x1x32xf32, #tpu.memory_space<vmem>>, vector<8x1x32xf32>
      %44 = vector.shape_cast %43 : vector<8x1x32xf32> to vector<8x32xf32>
      %45 = vector.broadcast %42 : vector<8x1xf32> to vector<8x32xf32>
      %46 = arith.mulf %44, %45 : vector<8x32xf32>
      %c0_30 = arith.constant 0 : index
      %c0_31 = arith.constant 0 : index
      %47 = vector.load %arg5[%c0_30, %c0_31] : memref<32x128xf32, #tpu.memory_space<vmem>>, vector<32x128xf32>
      %cst_32 = arith.constant dense<0.000000e+00> : vector<8x128xf32>
      %48 = tpu.matmul %46, %47, %cst_32 {dimension_numbers = #tpu.dot_dimension_numbers<[1], [0], [0], [1], [0, 0, 1, 1], [], []>} : vector<8x32xf32>, vector<32x128xf32>, vector<8x128xf32> -> vector<8x128xf32>
      %c0_33 = arith.constant 0 : index
      %c0_34 = arith.constant 0 : index
      %49 = vector.load %arg6[%c0_33, %c0_34] : memref<1x128xf32, #tpu.memory_space<vmem>>, vector<1x128xf32>
      %50 = vector.broadcast %49 : vector<1x128xf32> to vector<8x128xf32>
      %51 = arith.addf %48, %50 : vector<8x128xf32>
      %52 = vector.extract_strided_slice %51 {offsets = [0, 0], sizes = [8, 16], strides = [1, 1]} : vector<8x128xf32> to vector<8x16xf32>
      %53 = vector.extract_strided_slice %51 {offsets = [0, 16], sizes = [8, 16], strides = [1, 1]} : vector<8x128xf32> to vector<8x16xf32>
      %cst_35 = arith.constant 5.000000e-01 : f32
      %54 = vector.broadcast %cst_35 : f32 to vector<8x16xf32>
      %55 = arith.mulf %54, %53 : vector<8x16xf32>
      %56 = math.exp %55 : vector<8x16xf32>
      %c0_36 = arith.constant 0 : index
      %c0_37 = arith.constant 0 : index
      %57 = vector.load %arg7[%c0_36, %c0_37] : memref<8x16xf32, #tpu.memory_space<vmem>>, vector<8x16xf32>
      %58 = arith.mulf %56, %57 : vector<8x16xf32>
      %59 = arith.addf %52, %58 : vector<8x16xf32>
      %c0_38 = arith.constant 0 : index
      %c0_39 = arith.constant 0 : index
      %60 = vector.load %arg8[%c0_38, %c0_39] : memref<16x32xf32, #tpu.memory_space<vmem>>, vector<16x32xf32>
      %cst_40 = arith.constant dense<0.000000e+00> : vector<8x32xf32>
      %61 = tpu.matmul %52, %60, %cst_40 {dimension_numbers = #tpu.dot_dimension_numbers<[1], [0], [0], [1], [0, 0, 1, 1], [], []>} : vector<8x16xf32>, vector<16x32xf32>, vector<8x32xf32> -> vector<8x32xf32>
      %c0_41 = arith.constant 0 : index
      %c0_42 = arith.constant 0 : index
      %62 = vector.load %arg9[%c0_41, %c0_42] : memref<1x32xf32, #tpu.memory_space<vmem>>, vector<1x32xf32>
      %63 = vector.broadcast %62 : vector<1x32xf32> to vector<8x32xf32>
      %64 = arith.addf %61, %63 : vector<8x32xf32>
      %cst_43 = arith.constant 0.000000e+00 : f32
      %65 = vector.broadcast %cst_43 : f32 to vector<8x32xf32>
      %66 = arith.maximumf %64, %65 : vector<8x32xf32>
      %c0_44 = arith.constant 0 : index
      %c0_45 = arith.constant 0 : index
      %67 = vector.load %arg10[%c0_44, %c0_45] : memref<1x32xf32, #tpu.memory_space<vmem>>, vector<1x32xf32>
      %68 = vector.broadcast %67 : vector<1x32xf32> to vector<8x32xf32>
      %69 = arith.mulf %66, %68 : vector<8x32xf32>
      %cst_46 = arith.constant dense<0.000000e+00> : vector<8xf32>
      %70 = vector.multi_reduction <add>, %69, %cst_46 [1] : vector<8x32xf32> to vector<8xf32>
      %71 = vector.shape_cast %70 : vector<8xf32> to vector<8x1xf32>
      %c0_47 = arith.constant 0 : index
      %c0_48 = arith.constant 0 : index
      %72 = memref.load %arg11[%c0_47, %c0_48] : memref<1x1xf32, #tpu.memory_space<smem>>
      %73 = vector.broadcast %72 : f32 to vector<8x1xf32>
      %74 = arith.addf %71, %73 : vector<8x1xf32>
      %cst_49 = arith.constant 0.000000e+00 : f32
      %75 = vector.broadcast %cst_49 : f32 to vector<8x79xf32>
      %76 = tpu.concatenate %59, %52, %53, %74, %75 in 1 : vector<8x16xf32>, vector<8x16xf32>, vector<8x16xf32>, vector<8x1xf32>, vector<8x79xf32> -> vector<8x128xf32>
      %c0_50 = arith.constant 0 : index
      %c0_51 = arith.constant 0 : index
      %77 = vector.load %arg12[%c0_50, %c0_51] : memref<8x128xf32, #tpu.memory_space<vmem>>, vector<8x128xf32>
      tpu.vector_store %arg12[%c0_50, %c0_51], %76 {strides = array<i32>} : memref<8x128xf32, #tpu.memory_space<vmem>>, vector<8x128xf32>,
    } else {
    }
    return
  }
  func.func @transform_0(%arg0: i32, %arg1: i32) -> (i32, i32, i32) {
    %c0_i32 = arith.constant 0 : i32
    %c0_i32_0 = arith.constant 0 : i32
    return %arg0, %arg1, %c0_i32 : i32, i32, i32
  }
  func.func @transform_1(%arg0: i32, %arg1: i32) -> (i32, i32) {
    %c0_i32 = arith.constant 0 : i32
    %c0_i32_0 = arith.constant 0 : i32
    %c0_i32_1 = arith.constant 0 : i32
    return %c0_i32, %c0_i32_0 : i32, i32
  }
  func.func @transform_2(%arg0: i32, %arg1: i32) -> (i32, i32) {
    %c0_i32 = arith.constant 0 : i32
    %c0_i32_0 = arith.constant 0 : i32
    %c0_i32_1 = arith.constant 0 : i32
    return %c0_i32, %c0_i32_0 : i32, i32
  }
  func.func @transform_3(%arg0: i32, %arg1: i32) -> (i32, i32) {
    %c0_i32 = arith.constant 0 : i32
    %c0_i32_0 = arith.constant 0 : i32
    %c0_i32_1 = arith.constant 0 : i32
    return %c0_i32, %c0_i32_0 : i32, i32
  }
  func.func @transform_4(%arg0: i32, %arg1: i32) -> (i32, i32) {
    %c0_i32 = arith.constant 0 : i32
    %c0_i32_0 = arith.constant 0 : i32
    %c0_i32_1 = arith.constant 0 : i32
    return %c0_i32, %c0_i32_0 : i32, i32
  }
  func.func @transform_5(%arg0: i32, %arg1: i32) -> (i32, i32) {
    %c0_i32 = arith.constant 0 : i32
    %c0_i32_0 = arith.constant 0 : i32
    return %arg0, %c0_i32 : i32, i32
  }
  func.func @transform_6(%arg0: i32, %arg1: i32) -> (i32, i32) {
    %c0_i32 = arith.constant 0 : i32
    %c0_i32_0 = arith.constant 0 : i32
    %c0_i32_1 = arith.constant 0 : i32
    return %c0_i32, %c0_i32_0 : i32, i32
  }
  func.func @transform_7(%arg0: i32, %arg1: i32) -> (i32, i32) {
    %c0_i32 = arith.constant 0 : i32
    %c0_i32_0 = arith.constant 0 : i32
    %c0_i32_1 = arith.constant 0 : i32
    return %c0_i32, %c0_i32_0 : i32, i32
  }
  func.func @transform_8(%arg0: i32, %arg1: i32) -> (i32, i32) {
    %c0_i32 = arith.constant 0 : i32
    %c0_i32_0 = arith.constant 0 : i32
    %c0_i32_1 = arith.constant 0 : i32
    return %c0_i32, %c0_i32_0 : i32, i32
  }
  func.func @transform_9(%arg0: i32, %arg1: i32) -> (i32, i32) {
    %c0_i32 = arith.constant 0 : i32
    %c0_i32_0 = arith.constant 0 : i32
    %c0_i32_1 = arith.constant 0 : i32
    return %c0_i32, %c0_i32_0 : i32, i32
  }
  func.func @transform_10(%arg0: i32, %arg1: i32) -> (i32, i32) {
    %c0_i32 = arith.constant 0 : i32
    %c0_i32_0 = arith.constant 0 : i32
    return %arg0, %c0_i32 : i32, i32
  }
}

</mosaic_0001>

<bundles_post_ra>
// kernel: tpu_custom_call.1
= control target key start
LH: loop header
LB: loop body
LE: loop exit
PB: predicated region body
PF: predicated region fallthrough
CT: control target
= control target key end

     0   :  { %s3489_s0 = inlined_call_operand.hbm [shape: bf16[16,32,32], index: 0, kind: input, shape index: {}]   ;;  %s3490_s1 = inlined_call_operand.vmem [shape: f32[1,32], index: 1, kind: input, shape index: {}]   ;;  %s3491_s2 = inlined_call_operand.<no memory space> [shape: f32[1,1], index: 2, kind: input, shape index: {}]   ;;  %s3492_s3 = inlined_call_operand.hbm [shape: f32[32,128], index: 3, kind: input, shape index: {}]   ;;  %s3493_s4 = inlined_call_operand.vmem [shape: f32[1,128], index: 4, kind: input, shape index: {}]   ;;  %s3494_s5 = inlined_call_operand.hbm [shape: f32[16,16], index: 5, kind: input, shape index: {}]   ;;  %s3495_s6 = inlined_call_operand.hbm [shape: f32[16,32], index: 6, kind: input, shape index: {}]   ;;  %s3496_s7 = inlined_call_operand.vmem [shape: f32[1,32], index: 7, kind: input, shape index: {}]   ;;  %s3497_s8 = inlined_call_operand.vmem [shape: f32[1,32], index: 8, kind: input, shape index: {}]   ;;  %s3498_s9 = inlined_call_operand.<no memory space> [shape: f32[1,1], index: 9, kind: input, shape index: {}]   ;;  %s3499_s10 = inlined_call_operand.hbm [shape: f32[16,128], index: 10, kind: output, shape index: {}]  }
   0x1   :  { %3516 = sst [smem:[#allocation34_spill]] %s3492_s3 }
   0x2   :  { %3517 = sst [smem:[#allocation35_spill]] %s3493_s4 }
   0x3   :  { %3518 = sst [smem:[#allocation36_spill]] %s3495_s6 }
   0x4   :  { %3519 = sst [smem:[#allocation37_spill]] %s3496_s7 }
   0x5   :  { %3520 = sst [smem:[#allocation38_spill]] %s3497_s8 }
   0x6   :  { %3521 = sst [smem:[#allocation39_spill]] %s3499_s10 }
   0x7   :  { %15 = sst [smem:[#allocation5]] %s3491_s2 }
   0x8   :  { %16 = sst [smem:[#allocation6]] %s3498_s9 }
   0x9   :  { %17 = vsyncpa [#allocation8], 0 }
   0xa   :  { %19 = vsyncpa [#allocation8 + $0x1], 0 }
   0xb   :  { %20 = vsyncpa [#allocation11], 0 }
   0xc   :  { %21 = vsyncpa [#allocation9], 0 }
   0xd   :  { %23 = vsyncpa [#allocation9 + $0x1], 0  ;;  %s2787_s17 = smov 0   ;;  %s2789_s18 = smov 0  }
   0xe   :  { %s2791_s19 = smov 0   ;;  %s2793_s20 = smov 0  }
   0xf   :  { %s2795_s21 = smov 0   ;;  %s2797_s2 = smov 0  }
  0x10   :  { %s2799_s22 = smov 0   ;;  %s2801_s9 = smov 0  }
  0x11   :  { %s2803_s23 = smov 0   ;;  %s2805_s24 = smov 0  }
  0x12   :  { %s2807_s25 = smov 0  }
  0x13 LB: > { %3522 = sst [smem:[#allocation23_spill]] %s2661_s17  ;;  %s2841_s26 = sadd.s32 4294967295, %s2701_s25   ;;  %s2701_s25 = sphi %s2807_s25, %s29_s25   ;;  %s2697_s24 = sphi %s2805_s24, %s3574_s24   ;;  %s2693_s23 = sphi %s2803_s23, %s3566_s23   ;;  %s2689_s9 = sphi %s2801_s9, %s3573_s9   ;;  %s2685_s22 = sphi %s2799_s22, %s3565_s22   ;;  %s2681_s2 = sphi %s2797_s2, %s3564_s2   ;;  %s2677_s21 = sphi %s2795_s21, %s3572_s21   ;;  %s2673_s20 = sphi %s2793_s20, %s3571_s20   ;;  %s2669_s19 = sphi %s2791_s19, %s3570_s19   ;;  %s2665_s18 = sphi %s2789_s18, %s3569_s18   ;;  %s2661_s17 = sphi %s2787_s17, %s3568_s17  }
  0x14   : > { %3523 = sst [smem:[#allocation24_spill]] %s2681_s2  ;;  %s2151_s27 = sadd.s32 4294967294, %s2701_s25  }
  0x15   : > { %3524 = sst [smem:[#allocation25_spill]] %s2689_s9  ;;  %s38_s28 = sadd.s32 1, %s2693_s23 }
  0x16   : > { %3525 = sst [smem:[#allocation26_spill]] %s2693_s23  ;;  %s41_s29 = sadd.s32 1, %s2697_s24 }
  0x17   : > { %3526 = sst [smem:[#allocation27_spill]] %s2701_s25  ;;  %p39_p0 = scmp.ge.s32.totalorder %s38_s28, 2 }
  0x18   : > { %s50_s30 = sadd.s32 1, %s2681_s2  ;;  %p57_p1 = scmp.ne.s32.totalorder %s2681_s2, %s2677_s21 }
  0x19   : > { %p58_p2 = scmp.eq.s32.totalorder %s2701_s25, 0  ;;  %s3576_s28 = smov (%p39_p0, %s38_s28), 0 }
  0x1a   : > { %3527 = sst [smem:[#allocation28_spill]] %s3576_s28  ;;  %s3578_s29 = smov (!%p39_p0, %s41_s29), %s2697_s24 }
  0x1b   : > { %s46_s11 = ssub.s32 %s2693_s23, %s3576_s28  ;;  %p2857_p3 = por %p58_p2, %p57_p1 }
  0x1c   : > { %p43_p4 = scmp.ge.s32.totalorder %s3578_s29, 2  ;;  %p63_p5 = scmp.ne.s32.totalorder %s2677_s21, %s2673_s20 }
  0x1d   : > { %p3502_p6 = scmp.eq.s32.totalorder %s2841_s26, 0  ;;  %s160_s13 = sadd.s32 1, %s2669_s19 }
  0x1e   : > { %s3580_s29 = smov (%p43_p4, %s3578_s29), 0  ;;  %p167_p8 = scmp.ne.s32.totalorder %s2669_s19, %s2665_s18 }
  0x1f   : > { %3529 = sst [smem:[#allocation29_spill]] %s3580_s29  ;;  %p2868_p7 = por %p3502_p6, %p63_p5 }
  0x20   : > { %s45_s15 = ssub.s32 %s2697_s24, %s3580_s29  ;;  %p173_p9 = scmp.ne.s32.totalorder %s2665_s18, %s2661_s17 }
  0x21   : > { %s3530_s14 = scalar_select %p2868_p7, 1, 0 }
  0x22   : > { %s47_s16 = sor.u32 %s46_s11, %s45_s15  ;;  %p158_p10 = scmp.eq.s32.totalorder %s45_s15, 0 }
  0x23   : > { %p48_p11 = scmp.eq.s32.totalorder %s47_s16, 0  ;;  %p2883_p12 = por %p167_p8, %p58_p2 }
  0x24   : > { %s2888_s28 = scalar_select %p158_p10, %s2669_s19, %s160_s13  }
  0x25   : > { %s2891_s10 = scalar_select %p48_p11, %s2681_s2, %s50_s30  }
  0x26   : > { %3532 = sst [smem:[#allocation30_spill]] %s2888_s28  ;;  %p2898_p13 = por %p173_p9, %p3502_p6 }
  0x27   : > { %3533 = sst [smem:[#allocation31_spill]] %s2891_s10  ;;  %p281_p0 = scmp.eq.s32.totalorder %s2841_s26, 3 }
  0x28   : > { %s3534_s9 = scalar_select %p2898_p13, 1, 0 }
  0x29   : > { %p287_p1 = scmp.eq.s32.totalorder %s2151_s27, 3  ;;  %p2152_p4 = scmp.ge.s32.totalorder %s2701_s25, 1 }
  0x2a   : > { %p2907_p5 = por %p281_p0, %p167_p8  ;;  %p294_p2 = scmp.lt.s32.totalorder %s2701_s25, 5 }
  0x2b   : > { %p2915_p10 = por %p287_p1, %p173_p9  ;;  %s2703_s15 = smov [#allocation10]  }
  0x2c   : > { %s3535_s11 = scalar_select %p2907_p5, 1, 0 }
  0x2d   : > { %s3537_s13 = scalar_select %p2915_p10, 1, 0 }
  0x2e   : > { %3536 = sst [smem:[#allocation32_spill]] %s3535_s11  ;;  %p2919_p11 = pnand %p2152_p4, %p294_p2 }
  0x2f   : > { %3538 = sst [smem:[#allocation33_spill]] %s3537_s13  ;;  %s312_s16 = sshll.u32 %s2703_s15, 4  ;;  %s313_s16 = int_to_ptr.vmem [resolvable:$true] %s312_s16 }
  0x30   : > { %s3539_s30 = scalar_select %p2919_p11, 1, 0 }
  0x31   : > { %p2311_p6 = pneg %p2919_p11  ;;  %p3540_p8 = scmp.eq.s32.totalorder %s2841_s26, 0 }
  0x32   : > { %s2704_s29 = smov [#allocation13]   ;;  %s2502_s28 = scalar_lea.vmem %s313_s16, 512 }
  0x33   : > { %p2927_p0 = pnand %p2311_p6, %p3540_p8  ;;  %s328_s10 = sshll.u32 %s2704_s29, 4  ;;  %s329_s10 = int_to_ptr.vmem [resolvable:$true] %s328_s10 }
  0x34   : > { %p2503_p1 = scmp.ne.s32.totalorder %s313_s16, %s2502_s28  ;;  %p2510_p10 = scmp.lt.s32.totalorder %s313_s16, %s313_s16 }
  0x35   : > { %p2493_p9 = pneg %p2927_p0  ;;  %p2511_p5 = scmp.lt.s32.totalorder %s2502_s28, %s2502_s28 }
  0x37   : > { %p2505_p4 = pnand %p2503_p1, %p2493_p9  ;;  %p2512_p13 = por %p2511_p5, %p2510_p10 }
  0x39   : > { %p2506_p2 = pneg %p2505_p4 }
  0x3b   : > { %p2513_p6 = pnand %p2512_p13, %p2506_p2 }
  0x3d   : > { %2516 = shalt.err (!%p2513_p6)
}
  0x3e   : > { %s2705_s15 = smov 128   ;;  %s2706_s13 = smov 8  }
  0x3f   : > { %s3542_s3 = sld [smem:[#allocation34_spill]]  ;;  %s2528_s11 = scalar_lea.vmem %s329_s10, 256 }
  0x40   : > { %p2529_p8 = scmp.ne.s32.totalorder %s329_s10, %s2528_s11  ;;  %p2536_p7 = scmp.lt.s32.totalorder %s329_s10, %s329_s10 }
  0x41   : > { %p2537_p11 = scmp.lt.s32.totalorder %s2528_s11, %s2528_s11 }
  0x42   : > { %p2531_p1 = pnand %p2529_p8, %p2493_p9 }
  0x43   : > { %p2538_p5 = por %p2537_p11, %p2536_p7 }
  0x44   : > { %p2532_p4 = pneg %p2531_p1 }
  0x45   : > { %2314 = dma.hbm_to_vmem [thread:$0]  (!%p2927_p0), %s3542_s3, 512, %s313_s16, [#allocation11], %s2705_s15, %s2705_s15, %s2706_s13  }
  0x46   : > { %p2539_p13 = pnand %p2538_p5, %p2532_p4 }
  0x48   : > { %2542 = shalt.err (!%p2539_p13)
}
  0x49   : > { %s3543_s6 = sld [smem:[#allocation36_spill]]  ;;  %p2155_p10 = scmp.ge.s32.totalorder %s2701_s25, 4 }
  0x4b   : > { %347 = sbr.rel (%p2155_p10) target bundleno = 110 (0x6e), region = 48 }
  0x4f   : > { %2317 = dma.hbm_to_vmem [thread:$0]  (!%p2927_p0), %s3543_s6, 256, %s329_s10, [#allocation11], %s2705_s15, %s2705_s15, %s2706_s13  }
  0x50   : > { %s353_s17 = sand.u32 1, %s2681_s2   ;;  %s351_s11 = sand.u32 1, %s2701_s25  }
  0x51   : > { %s2156_s16 = sshll.u32 %s353_s17, 6  ;;  %s2158_s29 = sshll.u32 %s2693_s23, 1 }
  0x52   : > { %s2199_s27 = sshll.u32 %s2697_s24, 5  ;;  %s355_s3 = scalar_lea.vmem [#allocation7], %s2156_s16 }
  0x53   : > { %s377_s8 = sshll.u32 %s355_s3, 4  ;;  %s362_s10 = sadd.s32 %s2199_s27, %s2158_s29  ;;  %s378_s8 = int_to_ptr.vmem [resolvable:$true] %s377_s8 }
  0x54   : > { %s2707_s13 = smov 256   ;;  %s2160_s6 = sshll.u32 %s362_s10, 6 }
  0x55   : > { %2295 = sst [smem:[#allocation16]] (%p2857_p3), %s2707_s13  ;;  %s2708_s2 = smov 128  }
  0x56   : > { %s2294_s15 = scalar_select %p2857_p3, [#allocation0], [#allocation17] }
  0x57   : > { %2296 = sst [smem:[#allocation16 + $0x1]] (%p2857_p3), %s2708_s2  ;;  %s2709_s17 = smov 2  }
  0x58   : > { %s369_s28 = sld [smem:[%s2294_s15]]   ;;  %s2710_s16 = smov 64  }
  0x59   : > { %2297 = sst [smem:[#allocation16 + $0x2]] (%p2857_p3), %s2709_s17  ;;  %s364_s27 = scalar_lea.hbm %s3489_s0, %s2160_s6 }
  0x5a   : > { %2298 = sst [smem:[#allocation16 + $0x3]] (%p2857_p3), %s2710_s16  ;;  %s2711_s13 = smov 4  }
  0x5b   : > { %2299 = sst [smem:[#allocation16 + $0x4]] (%p2857_p3), %s2710_s16  ;;  %s352_s23 = scalar_lea.sflag [#allocation8], %s351_s11 }
  0x5c   : > { %2300 = sst [smem:[#allocation16 + $0x5]] (%p2857_p3), %s2711_s13  ;;  %s2712_s2 = smov 131072  }
  0x5d   : > { %s402_s17 = sand.u32 1, %s2669_s19   ;;  %s2164_s25 = sshll.u32 %s2697_s24, 7 }
  0x5e   : > { %s2161_s10 = sshll.u32 %s369_s28, 26  ;;  %s2163_s7 = sshll.u32 %s402_s17, 3 }
  0x5f   : > { %s2162_s15 = sadd.s32 134217728, %s2161_s10  ;;  %s409_s6 = scalar_lea.hbm %s3494_s5, %s2164_s25 }
  0x60   : > { %2301 = dma.general (%p2857_p3), %s364_s27, 1024, %s378_s8, %s352_s23, %s2712_s2, [#allocation16], %s2162_s15, 0  }
  0x61   : > { %s404_s16 = scalar_lea.vmem [#allocation12], %s2163_s7  ;;  %s2713_s12 = smov [#allocation12]  }
  0x62   : > { %s411_s29 = sshll.u32 %s404_s16, 4  ;;  %s2559_s11 = sshll.u32 %s2713_s12, 4  ;;  %s412_s29 = int_to_ptr.vmem [resolvable:$true] %s411_s29  ;;  %s2560_s11 = int_to_ptr.vmem [resolvable:$false] %s2559_s11 }
  0x63   : > { %s2555_s13 = scalar_lea.vmem %s412_s29, 128  ;;  %s2561_s8 = scalar_lea.vmem %s2560_s11, 256 }
  0x64   : > { %p2556_p7 = scmp.ne.s32.totalorder %s412_s29, %s2555_s13  ;;  %p2562_p3 = scmp.lt.s32.totalorder %s412_s29, %s2560_s11 }
  0x65   : > { %p2563_p9 = scmp.lt.s32.totalorder %s2561_s8, %s2555_s13 }
  0x66   : > { %p2557_p11 = pnand %p2556_p7, %p2883_p12 }
  0x67   : > { %p2564_p2 = por %p2563_p9, %p2562_p3 }
  0x68   : > { %p2558_p0 = pneg %p2557_p11 }
  0x6a   : > { %p2565_p6 = pnand %p2564_p2, %p2558_p0 }
  0x6c   : > { %2568 = shalt.err (!%p2565_p6)
}
  0x6d   : > { %2302 = dma.hbm_to_vmem [thread:$0]  (%p2883_p12), %s409_s6, 128, %s412_s29, %s352_s23  }
  0x6e PF: > { %p3544_p8 = scmp.ne.s32.totalorder %s3539_s30, 0 }
  0x6f   : > { %s422_s4 = sand.u32 (!%p3544_p8), 1, %s2841_s26   ;;  %s424_s7 = sand.u32 (!%p3544_p8), 1, %s2677_s21  }
  0x70   : > { %420 = sbr.rel (%p3544_p8) target bundleno = 1702 (0x6a6), region = 60  ;;  %s2166_s25 = sshll.u32 (!%p3544_p8), %s424_s7, 6 }
  0x71   : > { %s423_s28 = scalar_lea.sflag (!%p3544_p8), [#allocation8], %s422_s4  ;;  %s2986_s27 = scalar_lea.vmem (!%p3544_p8), [#allocation7], %s2166_s25 }
  0x72   : > { %p3545_p1 = scmp.ne.s32.totalorder (!%p3544_p8), %s3530_s14, 0 }
  0x75   : > { %2640 = dma.done.wait (%p3545_p1), %s423_s28, 1024  }
  0x76   : > { %2642 = vsyncadd (%p3545_p1), %s423_s28, 4294966272  ;;  %p3546_p12 = scmp.eq.s32.totalorder %s2841_s26, 0 }
  0x78   : > { %2644 = dma.done.wait (%p3546_p12), [#allocation11], 512   ;;  %p3547_p4 = pmov %p3546_p12 }
  0x79   : > { %s437_s23 = sand.u32 1, %s2665_s18   ;;  %p3548_p5 = scmp.ne.s32.totalorder %s3534_s9, 0 }
  0x7a   : > { %2646 = vsyncadd (%p3547_p4), [#allocation11], 4294966784  ;;  %s2999_s20 = sshll.u32 %s437_s23, 3 }
  0x7b   : > { %s439_s30 = scalar_lea.vmem [#allocation12], %s2999_s20 }
  0x7c   : > { %2648 = dma.done.wait (%p3548_p5), %s423_s28, 128  }
  0x7d   : > { %2650 = vsyncadd (%p3548_p5), %s423_s28, 4294967168  ;;  %p3549_p13 = pmov %p3547_p4 }
  0x7e   : > { %p3550_p10 = pmov %p3547_p4 }
  0x7f   : > { %2652 = dma.done.wait (%p3549_p13), [#allocation11], 256  }
  0x80   : > { %2654 = vsyncadd (%p3550_p10), [#allocation11], 4294967040  ;;  %s484_s14 = scalar_lea.vmem [#allocation14], %s2999_s20  ;;  %p2171_p7 = scmp.ne.s32.totalorder %s2685_s22, 0 }
  0x82   : > { %491 = sbr.rel (%p2171_p7) target bundleno = 141 (0x8d), region = 80 }
  0x87   : > { %vm492_vm0 = vcmask 7168   ;;  %vm495_vm1 = vcmask 253952   ;;  %v2714_v0 = vmov -inf   ;;  %v2715_v1 = vmov 0.0  }
  0x88   : > { %493 = vst.msk [vmem:[#allocation2] sm:$0xff] %vm492_vm0, %v2714_v0  ;;  %494 = vst.msk [vmem:[#allocation3] sm:$0xff] %vm492_vm0, %v2715_v1 }
  0x89   : > { %496 = vst.msk [vmem:[#allocation4] sm:$0x1] %vm495_vm1, %v2715_v1  ;;  %497 = vst.msk [vmem:[#allocation4 + $0x1] sm:$0x1] %vm495_vm1, %v2715_v1 }
  0x8a   : > { %498 = vst.msk [vmem:[#allocation4 + $0x2] sm:$0x1] %vm495_vm1, %v2715_v1  ;;  %499 = vst.msk [vmem:[#allocation4 + $0x3] sm:$0x1] %vm495_vm1, %v2715_v1 }
  0x8b   : > { %500 = vst.msk [vmem:[#allocation4 + $0x4] sm:$0x1] %vm495_vm1, %v2715_v1  ;;  %501 = vst.msk [vmem:[#allocation4 + $0x5] sm:$0x1] %vm495_vm1, %v2715_v1 }
  0x8c   : > { %502 = vst.msk [vmem:[#allocation4 + $0x6] sm:$0x1] %vm495_vm1, %v2715_v1  ;;  %503 = vst.msk [vmem:[#allocation4 + $0x7] sm:$0x1] %vm495_vm1, %v2715_v1 }
  0x8d PF: > { %v3013_v2 = vld [vmem:[%s2986_s27 + $0x8] sm:$0xff]   ;;  %v3021_v4 = vld [vmem:[%s2986_s27] sm:$0xff]   ;;  %v3028_v9 = vld [vmem:[%s2986_s27 + $0x10] sm:$0xff]   ;;  %vm559_vm2 = vcmask 261120   ;;  %v643_v63 = vlaneseq  ;;  %s608_s10 = sld [smem:[#allocation5]]  ;;  %vm654_vm3 = vcmask 130112  }
  0x8e   : > { %v3018_v3 = vld [vmem:[%s3490_s1] ss:$0 sm:$0xff]  ;;  %v523_v5 = vunpack.c.l.bf16 %v3013_v2  ;;  %v521_v6 = vunpack.c.l.bf16 %v3021_v4  ;;  %v524_v7 = vunpack.c.h.bf16 %v3013_v2  ;;  %v522_v8 = vunpack.c.h.bf16 %v3021_v4  ;;  %v3037_v16 = vld [vmem:[%s2986_s27 + $0x18] sm:$0xff]   ;;  %v3048_v25 = vld [vmem:[%s2986_s27 + $0x20] sm:$0xff]   ;;  %p2189_p11 = scmp.ne.s32.totalorder %s2685_s22, 1 }
  0x8f   : > { %v526_v10 = vunpack.c.h.bf16 %v3028_v9  ;;  %v525_v11 = vunpack.c.l.bf16 %v3028_v9  ;;  %v528_v19 = vunpack.c.h.bf16 %v3037_v16  ;;  %v527_v20 = vunpack.c.l.bf16 %v3037_v16  ;;  %v3057_v32 = vld [vmem:[%s2986_s27 + $0x28] sm:$0xff]   ;;  %v3066_v39 = vld [vmem:[%s2986_s27 + $0x30] sm:$0xff]   ;;  %v3075_v46 = vld [vmem:[%s2986_s27 + $0x38] sm:$0xff]   ;;  %s2723_s22 = smov (!%p2189_p11), 16   ;;  %s3551_s17 = sld [smem:[#allocation35_spill]] (!%p2189_p11) }
  0x90   : > { %v545_v12 = vmul.f32 %v3018_v3, %v523_v5  ;;  %v543_v13 = vmul.f32 %v3018_v3, %v521_v6  ;;  %v546_v14 = vmul.f32 %v3018_v3, %v524_v7  ;;  %v544_v15 = vmul.f32 %v3018_v3, %v522_v8  ;;  %s3552_s16 = sld [smem:[#allocation37_spill]] (!%p2189_p11)  ;;  %s2724_s11 = smov (!%p2189_p11), 112  }
  0x91   : > { %v548_v23 = vmul.f32 %v3018_v3, %v526_v10  ;;  %v547_v24 = vmul.f32 %v3018_v3, %v525_v11  ;;  %v550_v26 = vmul.f32 %v3018_v3, %v528_v19  ;;  %v549_v27 = vmul.f32 %v3018_v3, %v527_v20  ;;  %s3553_s12 = sld [smem:[#allocation38_spill]] (!%p2189_p11) }
  0x92   : > { %v566_v17 = vsel %vm559_vm2, %v545_v12, 0.0  ;;  %v560_v18 = vsel %vm559_vm2, %v543_v13, 0.0  ;;  %v569_v21 = vsel %vm559_vm2, %v546_v14, 0.0  ;;  %v563_v22 = vsel %vm559_vm2, %v544_v15, 0.0  ;;  %s2000_s8 = sld [smem:[#allocation6]] (!%p2189_p11) }
  0x93   : > { %567 = vadd.xlane.f32.xlu1 %v566_v17  ;;  %561 = vadd.xlane.f32.xlu0 %v560_v18  ;;  %v575_v28 = vsel %vm559_vm2, %v548_v23, 0.0  ;;  %v572_v29 = vsel %vm559_vm2, %v547_v24, 0.0  ;;  %v530_v30 = vunpack.c.h.bf16 %v3048_v25  ;;  %v529_v31 = vunpack.c.l.bf16 %v3048_v25 }
  0x94   : > { %v581_v33 = vsel %vm559_vm2, %v550_v26, 0.0  ;;  %v578_v34 = vsel %vm559_vm2, %v549_v27, 0.0  ;;  %v532_v37 = vunpack.c.h.bf16 %v3057_v32  ;;  %v531_v38 = vunpack.c.l.bf16 %v3057_v32 }
  0x95   : > { %v552_v35 = vmul.f32 %v3018_v3, %v530_v30  ;;  %v551_v36 = vmul.f32 %v3018_v3, %v529_v31  ;;  %v534_v40 = vunpack.c.h.bf16 %v3066_v39  ;;  %v533_v41 = vunpack.c.l.bf16 %v3066_v39 }
  0x96   : > { %v554_v44 = vmul.f32 %v3018_v3, %v532_v37  ;;  %v553_v45 = vmul.f32 %v3018_v3, %v531_v38  ;;  %v536_v48 = vunpack.c.h.bf16 %v3075_v46  ;;  %v535_v52 = vunpack.c.l.bf16 %v3075_v46 }
  0x97   : > { %570 = vadd.xlane.f32.xlu1 %v569_v21  ;;  %564 = vadd.xlane.f32.xlu0 %v563_v22  ;;  %v587_v42 = vsel %vm559_vm2, %v552_v35, 0.0  ;;  %v584_v43 = vsel %vm559_vm2, %v551_v36, 0.0  ;;  %v556_v47 = vmul.f32 %v3018_v3, %v534_v40  ;;  %v555_v51 = vmul.f32 %v3018_v3, %v533_v41 }
  0x98   : > { %v593_v49 = vsel %vm559_vm2, %v554_v44, 0.0  ;;  %v590_v50 = vsel %vm559_vm2, %v553_v45, 0.0  ;;  %v558_v55 = vmul.f32 %v3018_v3, %v536_v48  ;;  %v557_v56 = vmul.f32 %v3018_v3, %v535_v52 }
  0x99   : > { %v599_v53 = vsel %vm559_vm2, %v556_v47, 0.0  ;;  %v596_v54 = vsel %vm559_vm2, %v555_v51, 0.0  ;;  %v644_v5 = vand.u32 127, %v643_v63  ;;  %v3089_v8 = vshrl.u32 %v643_v63, 7 }
  0x9a   : > { %v605_v57 = vsel %vm559_vm2, %v558_v55, 0.0  ;;  %v602_v58 = vsel %vm559_vm2, %v557_v56, 0.0  ;;  %v609_v10 = vstv %s608_s10  ;;  %vm719_vm4 = vcmask 1041409  }
  0x9b   : > { %576 = vadd.xlane.f32.xlu1 %v575_v28  ;;  %573 = vadd.xlane.f32.xlu0 %v572_v29  ;;  %v649_v6 = vadd.s32 4294967288, %v644_v5  ;;  %v3099_v17 = vsub.s32 %v644_v5, %v3089_v8  ;;  %vm721_vm5 = vcmask 1042434   ;;  %vm723_vm6 = vcmask 1043459  }
  0x9c   : > { %vm725_vm7 = vcmask 1044484   ;;  %vm727_vm8 = vcmask 1045509   ;;  %vm729_vm9 = vcmask 1046534   ;;  %vm731_vm10 = vcmask 1047559  }
  0x9d   : > { %v3092_v11 = vsub.s32 %v649_v6, %v3089_v8  ;;  %vm734_vm11 = vcmask 130048   ;;  %vm984_vm12 = vcmask 7168   ;;  %vm2718_vm13 = vmmov 0  }
  0x9e   : > { %vm1676_vm14 = vcmask 253952  }
  0x9f   : > { %582 = vadd.xlane.f32.xlu1 %v581_v33  ;;  %579 = vadd.xlane.f32.xlu0 %v578_v34 }
  0xa3   : > { %588 = vadd.xlane.f32.xlu1 %v587_v42  ;;  %585 = vadd.xlane.f32.xlu0 %v584_v43 }
  0xa7   : > { %594 = vadd.xlane.f32.xlu1 %v593_v49  ;;  %591 = vadd.xlane.f32.xlu0 %v590_v50 }
  0xab   : > { %600 = vadd.xlane.f32.xlu1 %v599_v53  ;;  %597 = vadd.xlane.f32.xlu0 %v596_v54 }
  0xaf   : > { %606 = vadd.xlane.f32.xlu1 %v605_v57  ;;  %603 = vadd.xlane.f32.xlu0 %v602_v58 }
 0x11c   : > { %v568_v59 = vpop.xlane.xlu1 %567  ;;  %v562_v60 = vpop.xlane.xlu0 %561 }
 0x11d   : > { %v3101_v18 = vadd.f32 %v609_v10, %v568_v59  ;;  %v3103_v19 = vadd.f32 %v609_v10, %v562_v60 }
 0x11f   : > { %v659_v34 = vrot.slane %v3101_v18, %v3099_v17  ;;  %v648_v35 = vrot.slane %v3103_v19, %v3099_v17 }
 0x120   : > { %v571_v61 = vpop.xlane.xlu1 %570  ;;  %v565_v62 = vpop.xlane.xlu0 %564 }
 0x121   : > { %v3094_v12 = vadd.f32 %v609_v10, %v571_v61  ;;  %v3096_v13 = vadd.f32 %v609_v10, %v565_v62 }
 0x123   : > { %v663_v24 = vrot.slane %v3094_v12, %v3092_v11  ;;  %v653_v26 = vrot.slane %v3096_v13, %v3092_v11 }
 0x124   : > { %v577_v0 = vpop.xlane.xlu1 %576  ;;  %v574_v1 = vpop.xlane.xlu0 %573 }
 0x125   : > { %v3105_v20 = vadd.f32 %v609_v10, %v577_v0  ;;  %v3107_v21 = vadd.f32 %v609_v10, %v574_v1  ;;  %v664_v41 = vsel %vm654_vm3, %v663_v24, %v659_v34  ;;  %v655_v42 = vsel %vm654_vm3, %v653_v26, %v648_v35 }
 0x126   : > { %v720_v56 = vsel %vm719_vm4, %v664_v41, %v655_v42  ;;  %v2716_v26 = vmov 0   ;;  %v768_v41 = vsub.s32 5, %v3089_v8  ;;  %v772_v42 = vsub.s32 6, %v3089_v8 }
 0x127   : > { %v672_v36 = vrot.slane %v3105_v20, %v3092_v11  ;;  %v668_v37 = vrot.slane %v3107_v21, %v3099_v17  ;;  %2436 = vset.pattern.permute.xlu1 %v2716_v26  ;;  %2437 = vset.pattern.permute.xlu0 %v2716_v26 }
 0x128   : > { %v583_v7 = vpop.xlane.xlu1 %582  ;;  %v580_v3 = vpop.xlane.xlu0 %579 }
 0x129   : > { %v3109_v22 = vadd.f32 %v609_v10, %v583_v7  ;;  %v3111_v23 = vadd.f32 %v609_v10, %v580_v3  ;;  %v673_v52 = vsel %vm654_vm3, %v672_v36, %v668_v37  ;;  %v3188_v36 = vsub.s32 0, %v3089_v8 }
 0x12a   : > { %v722_v60 = vsel %vm721_vm5, %v673_v52, %v720_v56  ;;  %v752_v37 = vsub.s32 1, %v3089_v8 }
 0x12b   : > { %v681_v38 = vrot.slane %v3109_v22, %v3092_v11  ;;  %v677_v40 = vrot.slane %v3111_v23, %v3099_v17 }
 0x12c   : > { %v589_v14 = vpop.xlane.xlu1 %588  ;;  %v586_v15 = vpop.xlane.xlu0 %585 }
 0x12d   : > { %v3117_v27 = vadd.f32 %v609_v10, %v589_v14  ;;  %v3119_v28 = vadd.f32 %v609_v10, %v586_v15  ;;  %v682_v53 = vsel %vm654_vm3, %v681_v38, %v677_v40  ;;  %v756_v38 = vsub.s32 2, %v3089_v8 }
 0x12e   : > { %v724_v0 = vsel %vm723_vm6, %v682_v53, %v722_v60  ;;  %v764_v40 = vsub.s32 4, %v3089_v8 }
 0x12f   : > { %v690_v43 = vrot.slane %v3117_v27, %v3092_v11  ;;  %v686_v44 = vrot.slane %v3119_v28, %v3099_v17 }
 0x130   : > { %v595_v29 = vpop.xlane.xlu1 %594  ;;  %v592_v30 = vpop.xlane.xlu0 %591 }
 0x131   : > { %v3121_v31 = vadd.f32 %v609_v10, %v595_v29  ;;  %v3123_v33 = vadd.f32 %v609_v10, %v592_v30  ;;  %v691_v57 = vsel %vm654_vm3, %v690_v43, %v686_v44  ;;  %v3177_v29 = vld [vmem:[#allocation2] sm:$0xff] }
 0x132   : > { %v726_v7 = vsel %vm725_vm7, %v691_v57, %v724_v0 }
 0x133   : > { %v699_v48 = vrot.slane %v3121_v31, %v3092_v11  ;;  %v695_v49 = vrot.slane %v3123_v33, %v3099_v17 }
 0x134   : > { %v601_v45 = vpop.xlane.xlu1 %600  ;;  %v598_v47 = vpop.xlane.xlu0 %597 }
 0x135   : > { %v3147_v50 = vadd.f32 %v609_v10, %v601_v45  ;;  %v3149_v51 = vadd.f32 %v609_v10, %v598_v47  ;;  %v700_v61 = vsel %vm654_vm3, %v699_v48, %v695_v49  ;;  %v776_v47 = vsub.s32 7, %v3089_v8 }
 0x136   : > { %v728_v3 = vsel %vm727_vm8, %v700_v61, %v726_v7 }
 0x137   : > { %v708_v54 = vrot.slane %v3147_v50, %v3092_v11  ;;  %v704_v55 = vrot.slane %v3149_v51, %v3099_v17 }
 0x138   : > { %v607_v58 = vpop.xlane.xlu1 %606  ;;  %v604_v59 = vpop.xlane.xlu0 %603 }
 0x139   : > { %v3161_v62 = vadd.f32 %v609_v10, %v607_v58  ;;  %v3163_v63 = vadd.f32 %v609_v10, %v604_v59  ;;  %v709_v1 = vsel %vm654_vm3, %v708_v54, %v704_v55 }
 0x13a   : > { %v730_v14 = vsel %vm729_vm9, %v709_v1, %v728_v3 }
 0x13b   : > { %v717_v5 = vrot.slane %v3161_v62, %v3092_v11  ;;  %v713_v6 = vrot.slane %v3163_v63, %v3099_v17 }
 0x13d   : > { %v718_v10 = vsel %vm654_vm3, %v717_v5, %v713_v6 }
 0x13e   : > { %v732_v15 = vsel %vm731_vm10, %v718_v10, %v730_v14 }
 0x13f   : > { %v735_v24 = vsel %vm734_vm11, %v732_v15, -inf }
 0x140   : > { %736 = vmax.xlane.f32.xlu0 %v735_v24 }
 0x1c9   : > { %v737_v30 = vpop.xlane.xlu0 %736 }
 0x1ca   : > { %v3180_v34 = vmax.f32 %v3177_v29, %v737_v30 }
 0x1cc   : > { %v739_v35 = vsub.f32 %v3177_v29, %v3180_v34  ;;  %1685 = vst.msk [vmem:[#allocation2] sm:$0xff] %vm984_vm12, %v3180_v34  ;;  %744 = vperm.xlu1 %2436, %v3180_v34  }
 0x247   : > { %v745_v43 = vpop.permute.xlu1 %744 }
 0x248   : > { %v749_v44 = vrot.slane %v745_v43, %v3188_v36  ;;  %v753_v45 = vrot.slane %v745_v43, %v752_v37  ;;  %v757_v48 = vrot.slane %v745_v43, %v756_v38  ;;  %v765_v49 = vrot.slane %v745_v43, %v764_v40 }
 0x249   : > { %v769_v52 = vrot.slane %v745_v43, %v768_v41  ;;  %v773_v57 = vrot.slane %v745_v43, %v772_v42 }
 0x24a   : > { %v786_v53 = vsub.f32 %v3103_v19, %v749_v44  ;;  %v787_v54 = vsub.f32 %v3096_v13, %v749_v44  ;;  %v788_v55 = vsub.f32 %v3101_v18, %v753_v45  ;;  %v789_v56 = vsub.f32 %v3094_v12, %v753_v45 }
 0x24b   : > { %v794_v58 = vsub.f32 %v3119_v28, %v765_v49  ;;  %v795_v59 = vsub.f32 %v3117_v27, %v765_v49  ;;  %v796_v1 = vsub.f32 %v3123_v33, %v769_v52  ;;  %v760_v19 = vsub.s32 3, %v3089_v8 }
 0x24c   : > { %v802_v60 = vmul.f32 1.442695, %v786_v53  ;;  %v804_v61 = vmul.f32 1.442695, %v787_v54  ;;  %v806_v0 = vmul.f32 1.442695, %v788_v55  ;;  %v797_v13 = vsub.f32 %v3121_v31, %v769_v52 }
 0x24d   : > { %v808_v5 = vmul.f32 1.442695, %v789_v56  ;;  %v777_v12 = vrot.slane %v745_v43, %v776_v47  ;;  %v818_v18 = vmul.f32 1.442695, %v794_v58  ;;  %v790_v6 = vsub.f32 %v3107_v21, %v757_v48 }
 0x24e   : > { %2452 = vpow2.f32 %v802_v60  ;;  %v820_v28 = vmul.f32 1.442695, %v795_v59  ;;  %v791_v27 = vsub.f32 %v3105_v20, %v757_v48  ;;  %v822_v7 = vmul.f32 1.442695, %v796_v1 }
 0x24f   : > { %2454 = vpow2.f32 %v804_v61  ;;  %v798_v33 = vsub.f32 %v3149_v51, %v773_v57  ;;  %v824_v3 = vmul.f32 1.442695, %v797_v13  ;;  %v799_v10 = vsub.f32 %v3147_v50, %v773_v57 }
 0x250   : > { %2456 = vpow2.f32 %v806_v0  ;;  %v761_v31 = vrot.slane %v745_v43, %v760_v19  ;;  %v810_v14 = vmul.f32 1.442695, %v790_v6  ;;  %v800_v15 = vsub.f32 %v3163_v63, %v777_v12 }
 0x251   : > { %2458 = vpow2.f32 %v808_v5  ;;  %v812_v21 = vmul.f32 1.442695, %v791_v27  ;;  %v801_v24 = vsub.f32 %v3161_v62, %v777_v12  ;;  %v826_v20 = vmul.f32 1.442695, %v798_v33 }
 0x252   : > { %2460 = vpow2.f32 %v818_v18  ;;  %v828_v26 = vmul.f32 1.442695, %v799_v10  ;;  %v830_v51 = vmul.f32 1.442695, %v800_v15  ;;  %v792_v30 = vsub.f32 %v3111_v23, %v761_v31 }
 0x253   : > { %2462 = vpow2.f32 %v820_v28  ;;  %v832_v50 = vmul.f32 1.442695, %v801_v24  ;;  %v793_v43 = vsub.f32 %v3109_v22, %v761_v31  ;;  %v2717_v59 = vmov 0.0  }
 0x254   : > { %2464 = vpow2.f32 %v822_v7  ;;  %v814_v63 = vmul.f32 1.442695, %v792_v30  ;;  %2224 = vmatprep.subr.bf16.mxu0 %v2717_v59  ;;  %2226 = vmatprep.mubr.msk.bf16.mxu0 %vm2718_vm13, %v2717_v59 }
 0x255   : > { %2466 = vpow2.f32 %v824_v3  ;;  %v816_v62 = vmul.f32 1.442695, %v793_v43  ;;  %2225 = vmatpush3.bf16.msra.mxu0 %v3021_v4  ;;  %2230 = vmatprep.subr.bf16.mxu1 %v2717_v59  ;;  %v2719_v43 = vmov 1966171168  }
 0x256   : > { %2468 = vpow2.f32 %v810_v14  ;;  %2232 = vmatprep.mubr.msk.bf16.mxu1 %vm2718_vm13, %v2717_v59  ;;  %2236 = vmatprep.subr.bf16.mxu0 %v2717_v59 }
 0x257   : > { %2470 = vpow2.f32 %v812_v21  ;;  %2231 = vmatpush3.bf16.msra.mxu1 %v3013_v2  ;;  %v740_v2 = vmul.f32 1.442695, %v739_v35 }
 0x258   : > { %2472 = vpow2.f32 %v826_v20  ;;  %2242 = vmatprep.subr.bf16.mxu1 %v2717_v59 }
 0x259   : > { %2474 = vpow2.f32 %v828_v26 }
 0x25a   : > { %2476 = vpow2.f32 %v830_v51 }
 0x25b   : > { %v3228_v44 = vpop.eup %2452  ;;  %2478 = vpow2.f32 %v832_v50 }
 0x25c   : > { %v2455_v45 = vpop.eup %2454  ;;  %2480 = vpow2.f32 %v814_v63  ;;  %v1541_v63 = vunpack.c.l.s4 %v2719_v43 }
 0x25d   : > { %v3230_v48 = vpop.eup %2456  ;;  %v986_v49 = vpack.c.bf16 %v2455_v45, %v3228_v44  ;;  %2482 = vpow2.f32 %v816_v62 }
 0x25e   : > { %v2459_v52 = vpop.eup %2458  ;;  %2484 = vpow2.f32 %v740_v2 }
 0x25f   : > { %v3233_v23 = vpop.eup %2460  ;;  %v996_v53 = vunpack.c.h.b16 %v986_v49  ;;  %v995_v54 = vunpack.c.l.b16 %v986_v49  ;;  %v987_v22 = vpack.c.bf16 %v2459_v52, %v3230_v48 }
 0x260   : > { %v2463_v55 = vpop.eup %2462 }
 0x261   : > { %v3236_v56 = vpop.eup %2464  ;;  %1001 = vperm.xlu1 %2436, %v996_v53   ;;  %998 = vperm.xlu0 %2437, %v995_v54   ;;  %v990_v57 = vpack.c.bf16 %v2463_v55, %v3233_v23  ;;  %v1063_v61 = vunpack.c.l.b16 %v987_v22  ;;  %v1064_v6 = vunpack.c.h.b16 %v987_v22 }
 0x262   : > { %v2467_v58 = vpop.eup %2466 }
 0x263   : > { %v3242_v60 = vpop.eup %2468  ;;  %v1268_v0 = vunpack.c.h.b16 %v990_v57  ;;  %v991_v1 = vpack.c.bf16 %v2467_v58, %v3236_v56  ;;  %v1267_v51 = vunpack.c.l.b16 %v990_v57 }
 0x264   : > { %v2471_v5 = vpop.eup %2470 }
 0x265   : > { %v3250_v13 = vpop.eup %2472  ;;  %1066 = vperm.xlu1 %2436, %v1063_v61   ;;  %1273 = vperm.xlu0 %2437, %v1268_v0   ;;  %v1336_v28 = vunpack.c.h.b16 %v991_v1  ;;  %v988_v27 = vpack.c.bf16 %v2471_v5, %v3242_v60  ;;  %v1335_v30 = vunpack.c.l.b16 %v991_v1 }
 0x266   : > { %v2475_v12 = vpop.eup %2474 }
 0x267   : > { %v3252_v18 = vpop.eup %2476  ;;  %v992_v4 = vpack.c.bf16 %v2475_v12, %v3250_v13  ;;  %v1131_v3 = vunpack.c.l.b16 %v988_v27  ;;  %v1132_v15 = vunpack.c.h.b16 %v988_v27 }
 0x268   : > { %v2479_v7 = vpop.eup %2478 }
 0x269   : > { %1069 = vperm.xlu1 %2436, %v1064_v6   ;;  %1341 = vperm.xlu0 %2437, %v1336_v28   ;;  %v2481_v33 = vpop.eup %2480  ;;  %v1404_v10 = vunpack.c.h.b16 %v992_v4  ;;  %v993_v31 = vpack.c.bf16 %v2479_v7, %v3252_v18  ;;  %v1403_v50 = vunpack.c.l.b16 %v992_v4 }
 0x26a   : > { %v2483_v14 = vpop.eup %2482 }
 0x26b   : > { %v1472_v21 = vunpack.c.h.b16 %v993_v31  ;;  %v989_v24 = vpack.c.bf16 %v2483_v14, %v2481_v33  ;;  %v1471_v62 = vunpack.c.l.b16 %v993_v31  ;;  %v3265_v29 = vpop.eup %2484 }
 0x26d   : > { %1134 = vperm.xlu1 %2436, %v1131_v3   ;;  %1409 = vperm.xlu0 %2437, %v1404_v10   ;;  %v1199_v20 = vunpack.c.l.b16 %v989_v24  ;;  %v1200_v26 = vunpack.c.h.b16 %v989_v24 }
 0x271   : > { %1137 = vperm.xlu1 %2436, %v1132_v15   ;;  %1477 = vperm.xlu0 %2437, %v1472_v21  }
 0x275   : > { %1202 = vperm.xlu1 %2436, %v1199_v20   ;;  %856 = vperm.xlu0 %2437, %v2455_v45   ;;  %v1542_v45 = vunpack.c.0.s8 %v1541_v63 }
 0x277   : > { %v3263_v49 = vsub.s32 %v1542_v45, %v3089_v8 }
 0x279   : > { %1205 = vperm.xlu1 %2436, %v1200_v26   ;;  %862 = vperm.xlu0 %2437, %v2459_v52   ;;  %v1546_v34 = vrot.slane %v3265_v29, %v3263_v49 }
 0x27b   : > { %v1562_v35 = vrot.slane %v1546_v34, %v3263_v49  ;;  %v1554_v52 = vcombine.high %v1546_v34, %v1546_v34 }
 0x27d   : > { %1270 = vperm.xlu1 %2436, %v1267_v51   ;;  %868 = vperm.xlu0 %2437, %v2471_v5   ;;  %v1576_v53 = vrot.slane %v1554_v52, %v3263_v49  ;;  %v1584_v54 = vcombine.high %v1562_v35, %v1562_v35 }
 0x27f   : > { %v1586_v22 = vcombine.high %v1576_v53, %v1576_v53 }
 0x281   : > { %1338 = vperm.xlu1 %2436, %v1335_v30   ;;  %874 = vperm.xlu0 %2437, %v2483_v14  }
 0x285   : > { %1406 = vperm.xlu1 %2436, %v1403_v50   ;;  %880 = vperm.xlu0 %2437, %v2463_v55  }
 0x289   : > { %1474 = vperm.xlu1 %2436, %v1471_v62   ;;  %886 = vperm.xlu0 %2437, %v2467_v58  }
 0x28d   : > { %853 = vperm.xlu1 %2436, %v3228_v44   ;;  %892 = vperm.xlu0 %2437, %v2475_v12   ;;  %v1539_v44 = vcombine.high %v3265_v29, %v3265_v29 }
 0x291   : > { %859 = vperm.xlu1 %2436, %v3230_v48   ;;  %898 = vperm.xlu0 %2437, %v2479_v7   ;;  %v1553_v48 = vrot.slane %v1539_v44, %v3263_v49 }
 0x293   : > { %v1569_v55 = vrot.slane %v1553_v48, %v3263_v49  ;;  %v1555_v57 = vcombine.high %v1553_v48, %v1553_v48 }
 0x295   : > { %865 = vperm.xlu1 %2436, %v3242_v60   ;;  %1597 = vperm.xlu0 %2437, %v1562_v35   ;;  %v1583_v58 = vrot.slane %v1555_v57, %v3263_v49  ;;  %v1585_v60 = vcombine.high %v1569_v55, %v1569_v55 }
 0x299   : > { %871 = vperm.xlu1 %2436, %v2481_v33   ;;  %1605 = vperm.xlu0 %2437, %v1576_v53  }
 0x29d   : > { %877 = vperm.xlu1 %2436, %v3233_v23   ;;  %1613 = vperm.xlu0 %2437, %v1584_v54   ;;  %v1587_v23 = vcombine.high %v1583_v58, %v1583_v58 }
 0x2a1   : > { %883 = vperm.xlu1 %2436, %v3236_v56   ;;  %1621 = vperm.xlu0 %2437, %v1586_v22  }
 0x2a5   : > { %889 = vperm.xlu1 %2436, %v3250_v13   ;;  %1629 = vperm.xlu0 %2437, %v1569_v55  }
 0x2a9   : > { %895 = vperm.xlu1 %2436, %v3252_v18   ;;  %1637 = vperm.xlu0 %2437, %v1583_v58  }
 0x2ad   : > { %1645 = vperm.xlu0 %2437, %v1585_v60  }
 0x2b1   : > { %1653 = vperm.xlu0 %2437, %v1587_v23  }
 0x2dc   : > { %v1002_v61 = vpop.permute.xlu1 %1001  ;;  %v999_v0 = vpop.permute.xlu0 %998 }
 0x2dd   : > { %v1010_v56 = vrot.slane %v1002_v61, %v3092_v11  ;;  %v1006_v1 = vrot.slane %v999_v0, %v3099_v17 }
 0x2df   : > { %v1011_v5 = vsel %vm654_vm3, %v1010_v56, %v1006_v1 }
 0x2e0   : > { %v1012_v12 = vpack.c.b16 %v1011_v5, %v1011_v5  ;;  %v1067_v13 = vpop.permute.xlu1 %1066  ;;  %v1274_v6 = vpop.permute.xlu0 %1273 }
 0x2e1   : > { %v1074_v28 = vrot.slane %v1067_v13, %v3099_v17  ;;  %v1282_v63 = vrot.slane %v1274_v6, %v3092_v11 }
 0x2e2   : > { %2227 = vmatmul.mubr.msk.bf16.vlgmr.msra.gmra.mxu0 %vm734_vm11, %v1012_v12 }
 0x2e3   : > { %2237 = vmatpush3.bf16.msra.mxu0 %v3028_v9  ;;  %2238 = vmatprep.mubr.msk.bf16.mxu0 %vm2718_vm13, %v2717_v59 }
 0x2e4   : > { %v1070_v18 = vpop.permute.xlu1 %1069  ;;  %2248 = vmatprep.subr.bf16.mxu0 %v2717_v59  ;;  %v1342_v4 = vpop.permute.xlu0 %1341 }
 0x2e5   : > { %v1078_v27 = vrot.slane %v1070_v18, %v3092_v11  ;;  %v1350_v35 = vrot.slane %v1342_v4, %v3092_v11 }
 0x2e7   : > { %v1079_v7 = vsel %vm654_vm3, %v1078_v27, %v1074_v28 }
 0x2e8   : > { %v1080_v33 = vpack.c.b16 %v1079_v7, %v1079_v7  ;;  %v1135_v3 = vpop.permute.xlu1 %1134  ;;  %v1410_v9 = vpop.permute.xlu0 %1409 }
 0x2e9   : > { %v1142_v31 = vrot.slane %v1135_v3, %v3099_v17  ;;  %v1418_v22 = vrot.slane %v1410_v9, %v3092_v11 }
 0x2ea   : > { %2233 = vmatmul.mubr.msk.bf16.vlgmr.msra.gmra.mxu1 %vm734_vm11, %v1080_v33 }
 0x2eb   : > { %2243 = vmatpush3.bf16.msra.mxu1 %v3037_v16  ;;  %2244 = vmatprep.mubr.msk.bf16.mxu1 %vm2718_vm13, %v2717_v59 }
 0x2ec   : > { %v1138_v10 = vpop.permute.xlu1 %1137  ;;  %2254 = vmatprep.subr.bf16.mxu1 %v2717_v59  ;;  %v1478_v20 = vpop.permute.xlu0 %1477 }
 0x2ed   : > { %v1146_v14 = vrot.slane %v1138_v10, %v3092_v11  ;;  %v1486_v60 = vrot.slane %v1478_v20, %v3092_v11 }
 0x2ef   : > { %v1147_v15 = vsel %vm654_vm3, %v1146_v14, %v1142_v31 }
 0x2f0   : > { %v1148_v21 = vpack.c.b16 %v1147_v15, %v1147_v15  ;;  %v1203_v24 = vpop.permute.xlu1 %1202  ;;  %v3310_v30 = vpop.permute.xlu0 %856 }
 0x2f1   : > { %v1210_v26 = vrot.slane %v1203_v24, %v3099_v17  ;;  %v907_v31 = vrot.slane %v3310_v30, %v3092_v11 }
 0x2f2   : > { %2239 = vmatmul.mubr.msk.bf16.vlgmr.msra.gmra.mxu0 %vm734_vm11, %v1148_v21 }
 0x2f3   : > { %2249 = vmatpush3.bf16.msra.mxu0 %v3048_v25  ;;  %2250 = vmatprep.mubr.msk.bf16.mxu0 %vm2718_vm13, %v2717_v59 }
 0x2f4   : > { %v1206_v16 = vpop.permute.xlu1 %1205  ;;  %2260 = vmatprep.subr.bf16.mxu0 %v2717_v59  ;;  %v863_v53 = vpop.permute.xlu0 %862 }
 0x2f5   : > { %v1214_v2 = vrot.slane %v1206_v16, %v3092_v11  ;;  %v916_v7 = vrot.slane %v863_v53, %v3092_v11 }
 0x2f7   : > { %v1215_v51 = vsel %vm654_vm3, %v1214_v2, %v1210_v26 }
 0x2f8   : > { %v1216_v50 = vpack.c.b16 %v1215_v51, %v1215_v51  ;;  %v1271_v43 = vpop.permute.xlu1 %1270  ;;  %v869_v57 = vpop.permute.xlu0 %868 }
 0x2f9   : > { %v1278_v25 = vrot.slane %v1271_v43, %v3099_v17  ;;  %v925_v9 = vrot.slane %v869_v57, %v3092_v11 }
 0x2fa   : > { %2245 = vmatmul.mubr.msk.bf16.vlgmr.msra.gmra.mxu1 %vm734_vm11, %v1216_v50 }
 0x2fb   : > { %v1283_v62 = vsel %vm654_vm3, %v1282_v63, %v1278_v25  ;;  %2255 = vmatpush3.bf16.msra.mxu1 %v3057_v32  ;;  %2256 = vmatprep.mubr.msk.bf16.mxu1 %vm2718_vm13, %v2717_v59 }
 0x2fc   : > { %v1284_v45 = vpack.c.b16 %v1283_v62, %v1283_v62  ;;  %v1339_v34 = vpop.permute.xlu1 %1338  ;;  %2266 = vmatprep.subr.bf16.mxu1 %v2717_v59  ;;  %v875_v1 = vpop.permute.xlu0 %874 }
 0x2fd   : > { %v1346_v52 = vrot.slane %v1339_v34, %v3099_v17  ;;  %v934_v14 = vrot.slane %v875_v1, %v3092_v11 }
 0x2fe   : > { %2251 = vmatmul.mubr.msk.bf16.vlgmr.msra.gmra.mxu0 %vm734_vm11, %v1284_v45 }
 0x2ff   : > { %v1351_v54 = vsel %vm654_vm3, %v1350_v35, %v1346_v52  ;;  %2261 = vmatpush3.bf16.msra.mxu0 %v3066_v39  ;;  %2262 = vmatprep.mubr.msk.bf16.mxu0 %vm2718_vm13, %v2717_v59 }
 0x300   : > { %v1352_v32 = vpack.c.b16 %v1351_v54, %v1351_v54  ;;  %v1407_v44 = vpop.permute.xlu1 %1406  ;;  %v881_v5 = vpop.permute.xlu0 %880 }
 0x301   : > { %v1414_v48 = vrot.slane %v1407_v44, %v3099_v17  ;;  %v943_v24 = vrot.slane %v881_v5, %v3092_v11  ;;  %v1589_v5 = vld [vmem:[#allocation4 + $0x1] sm:$0x1] }
 0x302   : > { %2257 = vmatmul.mubr.msk.bf16.vlgmr.msra.gmra.mxu1 %vm734_vm11, %v1352_v32 }
 0x303   : > { %v1419_v55 = vsel %vm654_vm3, %v1418_v22, %v1414_v48  ;;  %2267 = vmatpush3.bf16.msra.mxu1 %v3075_v46  ;;  %2268 = vmatprep.mubr.msk.bf16.mxu1 %vm2718_vm13, %v2717_v59 }
 0x304   : > { %v1420_v39 = vpack.c.b16 %v1419_v55, %v1419_v55  ;;  %v1475_v58 = vpop.permute.xlu1 %1474  ;;  %v887_v13 = vpop.permute.xlu0 %886 }
 0x305   : > { %v1482_v23 = vrot.slane %v1475_v58, %v3099_v17  ;;  %v952_v26 = vrot.slane %v887_v13, %v3092_v11 }
 0x306   : > { %2263 = vmatmul.mubr.msk.bf16.vlgmr.msra.gmra.mxu0 %vm734_vm11, %v1420_v39 }
 0x307   : > { %v1487_v61 = vsel %vm654_vm3, %v1486_v60, %v1482_v23 }
 0x308   : > { %v1488_v0 = vpack.c.b16 %v1487_v61, %v1487_v61  ;;  %v854_v56 = vpop.permute.xlu1 %853  ;;  %v893_v28 = vpop.permute.xlu0 %892 }
 0x309   : > { %v903_v33 = vrot.slane %v854_v56, %v3099_v17  ;;  %v961_v30 = vrot.slane %v893_v28, %v3092_v11 }
 0x30a   : > { %2269 = vmatmul.mubr.msk.bf16.vlgmr.msra.gmra.mxu1 %vm734_vm11, %v1488_v0 }
 0x30b   : > { %v908_v2 = vsel %vm654_vm3, %v907_v31, %v903_v33 }
 0x30c   : > { %v860_v46 = vpop.permute.xlu1 %859  ;;  %v899_v63 = vpop.permute.xlu0 %898 }
 0x30d   : > { %v912_v18 = vrot.slane %v860_v46, %v3099_v17  ;;  %v970_v53 = vrot.slane %v899_v63, %v3092_v11  ;;  %v1588_v11 = vld [vmem:[#allocation4] sm:$0x1] }
 0x30f   : > { %v917_v15 = vsel %vm654_vm3, %v916_v7, %v912_v18  ;;  %v1590_v7 = vld [vmem:[#allocation4 + $0x2] sm:$0x1] }
 0x310   : > { %v866_v12 = vpop.permute.xlu1 %865  ;;  %v972_v43 = vsel %vm719_vm4, %v917_v15, %v908_v2  ;;  %v1598_v39 = vpop.permute.xlu0 %1597 }
 0x311   : > { %v921_v27 = vrot.slane %v866_v12, %v3099_v17  ;;  %v1603_v58 = vrot.slane %v1598_v39, %v3188_v36 }
 0x313   : > { %v926_v20 = vsel %vm654_vm3, %v925_v9, %v921_v27  ;;  %v1660_v23 = vmul.f32 %v1603_v58, %v1588_v11 }
 0x314   : > { %v872_v59 = vpop.permute.xlu1 %871  ;;  %v973_v62 = vsel %vm721_vm5, %v926_v20, %v972_v43  ;;  %v1606_v60 = vpop.permute.xlu0 %1605 }
 0x315   : > { %v930_v3 = vrot.slane %v872_v59, %v3099_v17  ;;  %v1611_v1 = vrot.slane %v1606_v60, %v3188_v36  ;;  %v1594_v60 = vld [vmem:[#allocation4 + $0x6] sm:$0x1] }
 0x317   : > { %v935_v51 = vsel %vm654_vm3, %v934_v14, %v930_v3  ;;  %v1661_v13 = vmul.f32 %v1611_v1, %v1589_v5  ;;  %v834_v3 = vld [vmem:[#allocation3] sm:$0xff] }
 0x318   : > { %v878_v6 = vpop.permute.xlu1 %877  ;;  %v974_v34 = vsel %vm723_vm6, %v935_v51, %v973_v62  ;;  %v835_v14 = vmul.f32 %v3265_v29, %v834_v3  ;;  %v1591_v51 = vld [vmem:[#allocation4 + $0x3] sm:$0x1] }
 0x319   : > { %v939_v10 = vrot.slane %v878_v6, %v3099_v17 }
 0x31b   : > { %v944_v25 = vsel %vm654_vm3, %v943_v24, %v939_v10 }
 0x31c   : > { %v884_v4 = vpop.permute.xlu1 %883  ;;  %v975_v54 = vsel %vm725_vm7, %v944_v25, %v974_v34  ;;  %v1592_v25 = vld [vmem:[#allocation4 + $0x4] sm:$0x1] }
 0x31d   : > { %v948_v21 = vrot.slane %v884_v4, %v3099_v17 }
 0x31f   : > { %v953_v45 = vsel %vm654_vm3, %v952_v26, %v948_v21 }
 0x320   : > { %v890_v16 = vpop.permute.xlu1 %889  ;;  %v976_v44 = vsel %vm727_vm8, %v953_v45, %v975_v54  ;;  %v1593_v54 = vld [vmem:[#allocation4 + $0x5] sm:$0x1] }
 0x321   : > { %v957_v50 = vrot.slane %v890_v16, %v3099_v17 }
 0x323   : > { %v962_v35 = vsel %vm654_vm3, %v961_v30, %v957_v50 }
 0x324   : > { %v896_v52 = vpop.permute.xlu1 %895  ;;  %v977_v48 = vsel %vm729_vm9, %v962_v35, %v976_v44 }
 0x325   : > { %v966_v32 = vrot.slane %v896_v52, %v3099_v17  ;;  %v1614_v17 = vpop.permute.xlu0 %1613 }
 0x326   : > { %v1619_v27 = vrot.slane %v1614_v17, %v3188_v36 }
 0x327   : > { %v971_v22 = vsel %vm654_vm3, %v970_v53, %v966_v32 }
 0x328   : > { %v978_v55 = vsel %vm731_vm10, %v971_v22, %v977_v48  ;;  %v1662_v10 = vmul.f32 %v1619_v27, %v1590_v7 }
 0x329   : > { %v980_v57 = vsel %vm734_vm11, %v978_v55, 0.0  ;;  %v1622_v59 = vpop.permute.xlu0 %1621 }
 0x32a   : > { %981 = vadd.xlane.f32.xlu1 %v980_v57  ;;  %v1627_v16 = vrot.slane %v1622_v59, %v3188_v36 }
 0x32c   : > { %v1663_v43 = vmul.f32 %v1627_v16, %v1591_v51 }
 0x32d   : > { %v1630_v33 = vpop.permute.xlu0 %1629 }
 0x32e   : > { %v1635_v30 = vrot.slane %v1630_v33, %v3188_v36 }
 0x330   : > { %v1664_v35 = vmul.f32 %v1635_v30, %v1592_v25 }
 0x331   : > { %v1638_v26 = vpop.permute.xlu0 %1637 }
 0x332   : > { %v1643_v34 = vrot.slane %v1638_v26, %v3188_v36 }
 0x334   : > { %v1665_v57 = vmul.f32 %v1643_v34, %v1593_v54 }
 0x335   : > { %v1646_v29 = vpop.permute.xlu0 %1645 }
 0x336   : > { %v1651_v48 = vrot.slane %v1646_v29, %v3188_v36 }
 0x339   : > { %v1654_v55 = vpop.permute.xlu0 %1653 }
 0x33a   : > { %v1659_v17 = vrot.slane %v1654_v55, %v3188_v36 }
 0x3a2   : > { %v1056_v61 = vpop.f32.mrf.mxu0 }
 0x3a3   : > { %v1668_v0 = vadd.f32 %v1660_v23, %v1056_v61 }
 0x3a4   : > { %v2228_v56 = vpop.f32.mrf.mxu0 }
 0x3a5   : > { %1677 = vst.msk [vmem:[#allocation4] sm:$0x1] %vm1676_vm14, %v1668_v0  ;;  %v1666_v0 = vmul.f32 %v1651_v48, %v1594_v60 }
 0x3a6   : > { %v1059_v46 = vpop.f32.mrf.mxu0 }
 0x3a7   : > { %v1595_v46 = vld [vmem:[#allocation4 + $0x7] sm:$0x1] }
 0x3a8   : > { %v2229_v12 = vpop.f32.mrf.mxu0 }
 0x3aa   : > { %v1124_v6 = vpop.f32.mrf.mxu1 }
 0x3ab   : > { %v1669_v18 = vadd.f32 %v1661_v13, %v1124_v6  ;;  %v1667_v13 = vmul.f32 %v1659_v17, %v1595_v46 }
 0x3ac   : > { %v2234_v28 = vpop.f32.mrf.mxu1 }
 0x3ad   : > { %1678 = vst.msk [vmem:[#allocation4 + $0x1] sm:$0x1] %vm1676_vm14, %v1669_v18 }
 0x3ae   : > { %v1127_v4 = vpop.f32.mrf.mxu1 }
 0x3b0   : > { %v2235_v9 = vpop.f32.mrf.mxu1 }
 0x3b2   : > { %v1192_v31 = vpop.f32.mrf.mxu0 }
 0x3b3   : > { %v1670_v15 = vadd.f32 %v1662_v10, %v1192_v31  ;;  %v982_v21 = vpop.xlane.xlu1 %981 }
 0x3b4   : > { %v983_v24 = vadd.f32 %v982_v21, %v835_v14  ;;  %v2240_v20 = vpop.f32.mrf.mxu0 }
 0x3b5   : > { %1679 = vst.msk [vmem:[#allocation4 + $0x2] sm:$0x1] %vm1676_vm14, %v1670_v15 }
 0x3b6   : > { %985 = vst.msk [vmem:[#allocation3] sm:$0xff] %vm984_vm12, %v983_v24  ;;  %v1195_v2 = vpop.f32.mrf.mxu0 }
 0x3b8   : > { %v2241_v50 = vpop.f32.mrf.mxu0 }
 0x3ba   : > { %v1260_v63 = vpop.f32.mrf.mxu1 }
 0x3bb   : > { %v1671_v62 = vadd.f32 %v1663_v43, %v1260_v63 }
 0x3bc   : > { %v2246_v45 = vpop.f32.mrf.mxu1 }
 0x3bd   : > { %1680 = vst.msk [vmem:[#allocation4 + $0x3] sm:$0x1] %vm1676_vm14, %v1671_v62 }
 0x3be   : > { %v1263_v52 = vpop.f32.mrf.mxu1  ;;  %v1328_v53 = vpop.f32.mrf.mxu0 }
 0x3bf   : > { %v1672_v32 = vadd.f32 %v1664_v35, %v1328_v53 }
 0x3c0   : > { %v2247_v44 = vpop.f32.mrf.mxu1  ;;  %v2252_v22 = vpop.f32.mrf.mxu0 }
 0x3c1   : > { %1681 = vst.msk [vmem:[#allocation4 + $0x4] sm:$0x1] %vm1676_vm14, %v1672_v32 }
 0x3c2   : > { %v1331_v39 = vpop.f32.mrf.mxu0  ;;  %v1396_v58 = vpop.f32.mrf.mxu1 }
 0x3c3   : > { %v1673_v11 = vadd.f32 %v1665_v57, %v1396_v58 }
 0x3c4   : > { %v2253_v23 = vpop.f32.mrf.mxu0  ;;  %v2258_v61 = vpop.f32.mrf.mxu1 }
 0x3c5   : > { %1682 = vst.msk [vmem:[#allocation4 + $0x5] sm:$0x1] %vm1676_vm14, %v1673_v11 }
 0x3c6   : > { %v1399_v56 = vpop.f32.mrf.mxu1  ;;  %v1464_v1 = vpop.f32.mrf.mxu0 }
 0x3c7   : > { %v1674_v5 = vadd.f32 %v1666_v0, %v1464_v1 }
 0x3c8   : > { %v2259_v12 = vpop.f32.mrf.mxu1  ;;  %v2264_v59 = vpop.f32.mrf.mxu0 }
 0x3c9   : > { %1683 = vst.msk [vmem:[#allocation4 + $0x6] sm:$0x1] %vm1676_vm14, %v1674_v5 }
 0x3ca   : > { %v1467_v6 = vpop.f32.mrf.mxu0  ;;  %v1532_v18 = vpop.f32.mrf.mxu1 }
 0x3cb   : > { %v1675_v28 = vadd.f32 %v1667_v13, %v1532_v18 }
 0x3cc   : > { %v2265_v27 = vpop.f32.mrf.mxu0  ;;  %v2270_v4 = vpop.f32.mrf.mxu1  ;;  %1689 = sbr.rel (%p2189_p11) target bundleno = 1675 (0x68b), region = 84 }
 0x3cd   : > { %1684 = vst.msk [vmem:[#allocation4 + $0x7] sm:$0x1] %vm1676_vm14, %v1675_v28 }
 0x3ce   : > { %v1535_v7 = vpop.f32.mrf.mxu1 }
 0x3d0   : > { %v2271_v33 = vpop.f32.mrf.mxu1 }
 0x3d1   : > { %v1690_v3 = vld [vmem:[#allocation3] sm:$0xff]  ;;  %v2720_v9 = vmov 0   ;;  %v1755_v10 = vld [vmem:[#allocation10 + $0x18] sm:$0xff]  ;;  %v2721_v31 = vmov 0.0   ;;  %vm2722_vm15 = vmmov 0   ;;  %v1753_v15 = vld [vmem:[#allocation10 + $0x8] sm:$0xff] }
 0x3d2   : > { %2486 = vset.pattern.permute.xlu0 %v2720_v9  ;;  %2487 = vrcp.f32 %v1690_v3  ;;  %2272 = vmatprep.subr.mxu0 %v2721_v31  ;;  %v1754_v14 = vld [vmem:[#allocation10 + $0x10] sm:$0xff]  ;;  %v1752_v24 = vld [vmem:[#allocation10] sm:$0xff]  ;;  %v1692_v16 = vld [vmem:[#allocation4] sm:$0x1]  ;;  %vm2008_vm0 = vcmask 392192   ;;  %vm2010_vm1 = vcmask 400384  }
 0x3d3   : > { %2280 = vmatprep.mubr.msk.f32.mxu0 %vm2722_vm15, %v2721_v31  ;;  %2273 = vmatpush3.msra.mxu0 %v1755_v10  ;;  %v1895_v20 = vld [vmem:[%s439_s30] sm:$0xff]  ;;  %v1693_v26 = vld [vmem:[#allocation4 + $0x1] sm:$0x1]  ;;  %v1694_v51 = vld [vmem:[#allocation4 + $0x2] sm:$0x1] }
 0x3d4   : > { %2283 = vmatprep.subr.mxu1 %v2721_v31  ;;  %2274 = vmatprep.subr.mxu0 %v2721_v31  ;;  %v1695_v50 = vld [vmem:[#allocation4 + $0x3] sm:$0x1]  ;;  %v1696_v30 = vld [vmem:[#allocation4 + $0x4] sm:$0x1]  ;;  %v1697_v43 = vld [vmem:[#allocation4 + $0x5] sm:$0x1] }
 0x3d5   : > { %2287 = vmatprep.mubr.msk.f32.mxu1 %vm2722_vm15, %v2721_v31  ;;  %2275 = vmatpush3.msra.mxu0 %v1754_v14  ;;  %v1698_v63 = vld [vmem:[#allocation4 + $0x6] sm:$0x1]  ;;  %v1699_v25 = vld [vmem:[#allocation4 + $0x7] sm:$0x1]  ;;  %v1906_v0 = vld [vmem:[#allocation13] sm:$0xff] }
 0x3d6   : > { %2276 = vmatprep.subr.mxu0 %v2721_v31  ;;  %v1907_v17 = vld [vmem:[#allocation13 + $0x8] sm:$0xff]  ;;  %v2190_v56 = vld [vmem:[%s3551_s17] ss:$0 sm:$0xff] }
 0x3d7   : > { %2277 = vmatpush3.msra.mxu0 %v1753_v15  ;;  %2284 = vmatpush3.msra.mxu1 %v1907_v17  ;;  %v2194_v18 = vld [vmem:[%s3553_s12] ss:$0 sm:$0xff] }
 0x3d8   : > { %2278 = vmatprep.subr.mxu0 %v2721_v31  ;;  %2285 = vmatprep.subr.mxu1 %v2721_v31  ;;  %v2001_v31 = vstv %s2000_s8 }
 0x3d9   : > { %2279 = vmatpush3.msra.mxu0 %v1752_v24  ;;  %2286 = vmatpush3.msra.mxu1 %v1906_v0 }
 0x3df   : > { %v2488_v21 = vpop.eup %2487 }
 0x3e0   : > { %1702 = vperm.xlu0 %2486, %v2488_v21  }
 0x3e4   : > { %1897 = vrot.lane.b32.xlu0 %v1895_v20, %s2723_s22 }
 0x45b   : > { %v1703_v2 = vpop.permute.xlu0 %1702 }
 0x45c   : > { %v1707_v29 = vrot.slane %v1703_v2, %v3188_v36  ;;  %v1711_v62 = vrot.slane %v1703_v2, %v752_v37  ;;  %v1715_v45 = vrot.slane %v1703_v2, %v756_v38  ;;  %v1719_v34 = vrot.slane %v1703_v2, %v760_v19 }
 0x45d   : > { %v1723_v35 = vrot.slane %v1703_v2, %v764_v40  ;;  %v1727_v52 = vrot.slane %v1703_v2, %v768_v41  ;;  %v1731_v53 = vrot.slane %v1703_v2, %v772_v42  ;;  %v1735_v36 = vrot.slane %v1703_v2, %v776_v47 }
 0x45e   : > { %v1744_v54 = vmul.f32 %v1707_v29, %v1692_v16  ;;  %v1745_v37 = vmul.f32 %v1711_v62, %v1693_v26  ;;  %v1746_v32 = vmul.f32 %v1715_v45, %v1694_v51  ;;  %v1747_v44 = vmul.f32 %v1719_v34, %v1695_v50 }
 0x45f   : > { %v1748_v38 = vmul.f32 %v1723_v35, %v1696_v30  ;;  %v1749_v22 = vmul.f32 %v1727_v52, %v1697_v43  ;;  %v1750_v48 = vmul.f32 %v1731_v53, %v1698_v63  ;;  %v1751_v19 = vmul.f32 %v1735_v36, %v1699_v25  ;;  %v1898_v3 = vpop.permute.xlu0 %1897 }
 0x460   : > { %v1771_v55 = vcombine.low %v1744_v54, %v1745_v37  ;;  %v1772_v57 = vcombine.low %v1746_v32, %v1747_v44 }
 0x461   : > { %v1773_v40 = vcombine.low %v1748_v38, %v1749_v22  ;;  %v1774_v39 = vcombine.low %v1750_v48, %v1751_v19 }
 0x462   : > { %v1781_v41 = vrot.slane %v1771_v55, %v3263_v49  ;;  %v1788_v58 = vrot.slane %v1772_v57, %v3263_v49 }
 0x463   : > { %v1795_v42 = vrot.slane %v1773_v40, %v3263_v49  ;;  %v1802_v8 = vrot.slane %v1774_v39, %v3263_v49 }
 0x464   : > { %v1803_v47 = vcombine.low %v1781_v41, %v1788_v58 }
 0x465   : > { %v1804_v60 = vcombine.low %v1795_v42, %v1802_v8 }
 0x466   : > { %v1811_v11 = vrot.slane %v1803_v47, %v3263_v49 }
 0x467   : > { %v1818_v23 = vrot.slane %v1804_v60, %v3263_v49  ;;  %v2192_v49 = vld [vmem:[%s3552_s16] ss:$0 sm:$0xff] }
 0x469   : > { %v1819_v61 = vcombine.low %v1811_v11, %v1818_v23 }
 0x46b   : > { %2281 = vmatmul.mubr.msk.f32.vlgmr.msra.gmra.mxu0 %vm559_vm2, %v1819_v61 }
 0x52b   : > { %v1888_v1 = vpop.f32.mrf.mxu0 }
 0x52c   : > { %v1889_v46 = vadd.f32 %v2190_v56, %v1888_v1 }
 0x52d   : > { %v2282_v5 = vpop.f32.mrf.mxu0 }
 0x52e   : > { %2003 = vrot.lane.b32.xlu0 %v1889_v46, %s2723_s22  ;;  %2288 = vmatmul.mubr.msk.f32.vlgmr.msra.gmra.mxu1 %vm734_vm11, %v1889_v46  ;;  %v1892_v12 = vmul.f32 0.5, %v1889_v46 }
 0x530   : > { %v1893_v28 = vmul.f32 1.442695, %v1892_v12 }
 0x532   : > { %2489 = vpow2.f32 %v1893_v28 }
 0x53f   : > { %v2490_v33 = vpop.eup %2489 }
 0x540   : > { %v1900_v9 = vmul.f32 %v2490_v33, %v1898_v3 }
 0x5a0   : > { %v2004_v21 = vpop.permute.xlu0 %2003 }
 0x5ee   : > { %v1984_v59 = vpop.f32.mrf.mxu1 }
 0x5ef   : > { %v1985_v13 = vadd.f32 %v2192_v49, %v1984_v59 }
 0x5f0   : > { %v2289_v6 = vpop.f32.mrf.mxu1 }
 0x5f1   : > { %v1988_v27 = vmax.f32 %v1985_v13, 0.0 }
 0x5f3   : > { %v1996_v4 = vmul.f32 %v2194_v18, %v1988_v27 }
 0x5f5   : > { %v1997_v7 = vsel %vm559_vm2, %v1996_v4, 0.0 }
 0x5f6   : > { %1998 = vadd.xlane.f32.xlu1 %v1997_v7 }
 0x607   : > { %1902 = vrot.lane.b32.xlu1 %v1900_v9, %s2724_s11 }
 0x67f   : > { %v1999_v10 = vpop.xlane.xlu1 %1998 }
 0x680   : > { %v2002_v24 = vadd.f32 %v2001_v31, %v1999_v10 }
 0x683   : > { %v1903_v14 = vpop.permute.xlu1 %1902 }
 0x684   : > { %v1905_v15 = vadd.f32 %v1903_v14, %v1889_v46 }
 0x686   : > { %v2006_v20 = vsel %vm734_vm11, %v1905_v15, %v2004_v21 }
 0x687   : > { %v2007_v16 = vsel %vm559_vm2, %v2006_v20, %v2004_v21 }
 0x688   : > { %v2009_v26 = vsel %vm2008_vm0, %v2007_v16, %v2002_v24 }
 0x689   : > { %v2011_v2 = vsel %vm2010_vm1, %v2009_v26, 0.0 }
 0x68a   : > { %2012 = vst [vmem:[%s484_s14] sm:$0xff] %v2011_v2 }
 0x68b PF: > { %s3554_s4 = sld [smem:[#allocation25_spill]]  ;;  %s2027_s26 = sshll.u32 %s484_s14, 4  ;;  %s2028_s26 = int_to_ptr.vmem [resolvable:$true] %s2027_s26 }
 0x68c   : > { %s3555_s7 = sld [smem:[#allocation32_spill]]  ;;  %s2014_s10 = scalar_lea.sflag [#allocation9], %s437_s23 }
 0x68d   : > { %s3556_s30 = sld [smem:[#allocation39_spill]]  ;;  %s2569_s22 = scalar_lea.vmem %s2028_s26, 128 }
 0x68e   : > { %p2570_p0 = scmp.ne.s32.totalorder %s2028_s26, %s2569_s22  ;;  %s2725_s15 = smov [#allocation14]  }
 0x68f   : > { %s2573_s2 = sshll.u32 %s2725_s15, 4  ;;  %s2574_s2 = int_to_ptr.vmem [resolvable:$false] %s2573_s2 }
 0x690   : > { %s2575_s17 = scalar_lea.vmem %s2574_s2, 256  ;;  %p2576_p6 = scmp.lt.s32.totalorder %s2028_s26, %s2574_s2 }
 0x691   : > { %s2196_s25 = sshll.u32 %s3554_s4, 7  ;;  %p2577_p8 = scmp.lt.s32.totalorder %s2575_s17, %s2569_s22 }
 0x692   : > { %p3557_p3 = scmp.ne.s32.totalorder %s3555_s7, 0 }
 0x693   : > { %s2025_s9 = scalar_lea.hbm %s3556_s30, %s2196_s25  ;;  %p2578_p1 = por %p2577_p8, %p2576_p6 }
 0x694   : > { %p2571_p9 = pnand %p2570_p0, %p3557_p3 }
 0x696   : > { %p2572_p2 = pneg %p2571_p9 }
 0x698   : > { %p2579_p12 = pnand %p2578_p1, %p2572_p2 }
 0x69a   : > { %2582 = shalt.err (!%p2579_p12)
}
 0x69b   : > { %s2583_s3 = scalar_lea.hbm %s2025_s9, 128  ;;  %s2587_s14 = scalar_lea.hbm %s3556_s30, 256 }
 0x69c   : > { %p2584_p4 = scmp.ne.s32.totalorder %s2025_s9, %s2583_s3  ;;  %p2588_p10 = scmp.lt.s32.totalorder %s2025_s9, %s3556_s30 }
 0x69d   : > { %p2589_p7 = scmp.lt.s32.totalorder %s2587_s14, %s2583_s3 }
 0x69e   : > { %p2585_p5 = pnand %p2584_p4, %p3557_p3 }
 0x69f   : > { %p2590_p11 = por %p2589_p7, %p2588_p10 }
 0x6a0   : > { %p2586_p13 = pneg %p2585_p5 }
 0x6a2   : > { %p2591_p0 = pnand %p2590_p11, %p2586_p13 }
 0x6a4   : > { %2594 = shalt.err (!%p2591_p0)
}
 0x6a5   : > { %2309 = dma.vmem_to_hbm [thread:$0]  (%p3557_p3), %s2028_s26, 128, %s2025_s9, %s2014_s10  }
 0x6a6 PF: > { %s3558_s29 = sld [smem:[#allocation27_spill]] }
 0x6a7   : > { %s3559_s13 = sld [smem:[#allocation23_spill]] }
 0x6a8   : > { %s3560_s12 = sld [smem:[#allocation33_spill]] }
 0x6ac   : > { %p2326_p9 = scmp.ge.s32.totalorder %s3558_s29, 2 }
 0x6ad   : > { %s2039_s11 = sand.u32 1, %s3559_s13  }
 0x6ae   : > { %p3561_p2 = scmp.ne.s32.totalorder %s3560_s12, 0  ;;  %s2040_s8 = scalar_lea.sflag [#allocation9], %s2039_s11 }
 0x6b0   : > { %p2319_p6 = pnand %p2326_p9, %p3561_p2 }
 0x6b2   : > { %p2320_p8 = pneg %p2319_p6 }
 0x6b4   : > { %2656 = dma.done.wait (%p2320_p8), %s2040_s8, 128  }
 0x6b5   : > { %2658 = vsyncadd (%p2320_p8), %s2040_s8, 4294967168  ;;  %s29_s25 = sadd.s32 1, %s3558_s29   ;;  %s3562_s4 = sld [smem:[#allocation30_spill]] }
 0x6b6   : > { %p26_p1 = scmp.ge.s32.totalorder %s29_s25, 6   ;;  %s3563_s7 = sld [smem:[#allocation24_spill]] }
 0x6b7   : > { %s3564_s2 = sld [smem:[#allocation31_spill]]  ;;  %s3568_s17 = smov %s2665_s18 }
 0x6b8   : > { %s3565_s22 = sld [smem:[#allocation26_spill]]  ;;  %s3569_s18 = smov %s2669_s19 }
 0x6b9   : > { %s3566_s23 = sld [smem:[#allocation28_spill]]  ;;  %s3571_s20 = smov %s2677_s21 }
 0x6ba   : > { %s3567_s28 = sld [smem:[#allocation29_spill]]  ;;  %s3573_s9 = smov %s2697_s24 }
 0x6bb   : > { %s3570_s19 = smov %s3562_s4 }
 0x6bc   : > { %s3572_s21 = smov %s3563_s7  ;;  %28 = sbr.rel (!%p26_p1) target bundleno = 19 (0x13), region = 137 }
 0x6c0   : > { %s3574_s24 = smov %s3567_s28 }
 0x6c1   :  { %2045 = vsyncpa [#allocation8], 1 }
 0x6c2   :  { %2047 = vsyncpa [#allocation8 + $0x1], 1 }
 0x6c3   :  { %2048 = vsyncpa [#allocation11], 1 }
 0x6c4   :  { %2049 = vsyncpa [#allocation9], 1 }
 0x6c5   :  { %2051 = vsyncpa [#allocation9 + $0x1], 1 }

</bundles_post_ra>
